<compile_context>
chip_gen: v6e
topology: v6e:2x2x1
jax: 0.10.0
libtpu: 0.0.40
codegen_flags: <defaults>
</compile_context>

<pallas_src>
import functools

import jax
import jax.numpy as jnp
from jax.experimental import pallas as pl
from jax.experimental.pallas import tpu as pltpu

MATMUL_DTYPE = jnp.bfloat16   # MXU operand dtype; accumulation & elementwise stay f32
LANE = 128                    # lane-dense logits slab width


# ----------------------------------------------------------------------------- helpers
def _erf_approx(x):
    # Abramowitz & Stegun 7.1.26, |error| <= 1.5e-7 (exp/mul/add + EUP reciprocal only).
    a1, a2, a3, a4, a5 = 0.254829592, -0.284496736, 1.421413741, -1.453152027, 1.061405429
    p = 0.3275911
    sgn = jnp.where(x >= 0.0, 1.0, -1.0)
    z = jnp.abs(x)
    t = pl.reciprocal(1.0 + p * z, approx=True)      # divide -> EUP slot
    poly = ((((a5 * t + a4) * t + a3) * t + a2) * t + a1) * t
    return sgn * (1.0 - poly * jnp.exp(-z * z))


def _gelu_erf(x):
    # erf-form GELU, as used by HF BERT (non-approximate).
    return 0.5 * x * (1.0 + _erf_approx(x * 0.7071067811865476))


# ----------------------------------------------------------------------------- kernel
def _bert_layer_kernel(x_ref, mask_ref, eg_ref, eb_ref,
                       wqkv_ref, bqkv_ref, wo_ref, bo_ref, ln1g_ref, ln1b_ref,
                       wi_ref, bi_ref, wo2_ref, bo2_ref, ln2g_ref, ln2b_ref,
                       pw_ref, pb_ref, cw_ref, cb_ref,
                       out_ref, x_sc,
                       *, num_heads, eps, bt, seq_len):
    l = pl.program_id(1)
    n_layers = pl.num_programs(1)
    H = x_ref.shape[2]
    hd = H // num_heads
    M = bt * seq_len

    def layernorm(v, g, b):
        mean = jnp.mean(v, axis=-1, keepdims=True)
        c = v - mean
        var = jnp.mean(c * c, axis=-1, keepdims=True)
        return c * jax.lax.rsqrt(var + eps) * g + b

    # ---- first layer step: embedding LayerNorm, park token-flattened activations in VMEM
    @pl.when(l == 0)
    def _():
        xe = x_ref[...].astype(jnp.float32).reshape(M, H)
        x_sc[...] = layernorm(xe, eg_ref[...], eb_ref[...])

    xf = x_sc[...]                                   # (M, H) f32, carried across layers
    madd = mask_ref[...]                             # (bt, 1, S) additive key mask

    # ---- fused QKV projection (LoRA + 1/sqrt(hd) already folded into weights)
    qkv = jnp.dot(xf.astype(MATMUL_DTYPE), wqkv_ref[0],
                  preferred_element_type=jnp.float32) + bqkv_ref[0]        # (M, 3H)
    q3 = qkv[:, 0:H].reshape(bt, seq_len, H)
    k3 = qkv[:, H:2 * H].reshape(bt, seq_len, H)
    v3 = qkv[:, 2 * H:3 * H].reshape(bt, seq_len, H)

    # ---- attention: small head loop, all sequences of the tile batched per einsum
    ctx_heads = []
    for h in range(num_heads):
        sl = slice(h * hd, (h + 1) * hd)
        qh = q3[:, :, sl].astype(MATMUL_DTYPE)
        kh = k3[:, :, sl].astype(MATMUL_DTYPE)
        vh = v3[:, :, sl].astype(MATMUL_DTYPE)
        s = jnp.einsum('bqd,bkd->bqk', qh, kh,
                       preferred_element_type=jnp.float32)                 # (bt, S, S)
        s = s + madd
        s = s - jnp.max(s, axis=-1, keepdims=True)
        p = jnp.exp(s)
        p = p * pl.reciprocal(jnp.sum(p, axis=-1, keepdims=True), approx=True)
        ctx_heads.append(jnp.einsum('bqk,bkd->bqd', p.astype(MATMUL_DTYPE), vh,
                                    preferred_element_type=jnp.float32))   # (bt, S, hd)
    ctx = jnp.concatenate(ctx_heads, axis=-1).reshape(M, H)

    # ---- single K=H output projection on the merged context (was nh K=hd matmuls)
    attn = jnp.dot(ctx.astype(MATMUL_DTYPE), wo_ref[0],
                   preferred_element_type=jnp.float32) + bo_ref[0]
    x1 = layernorm(xf + attn, ln1g_ref[0], ln1b_ref[0])

    # ---- feed-forward
    inter = jnp.dot(x1.astype(MATMUL_DTYPE), wi_ref[0],
                    preferred_element_type=jnp.float32) + bi_ref[0]
    inter = _gelu_erf(inter)
    ffn = jnp.dot(inter.astype(MATMUL_DTYPE), wo2_ref[0],
                  preferred_element_type=jnp.float32) + bo2_ref[0]
    x2 = layernorm(x1 + ffn, ln2g_ref[0], ln2b_ref[0])
    x_sc[...] = x2

    # ---- last layer step: pooler (CLS tokens) + classifier, lane-dense padded logits
    @pl.when(l == n_layers - 1)
    def _():
        cls = x2.reshape(bt, seq_len, H)[:, 0, :]                          # (bt, H)
        pooled = jnp.tanh(jnp.dot(cls.astype(MATMUL_DTYPE), pw_ref[...],
                                  preferred_element_type=jnp.float32) + pb_ref[...])
        logits = jnp.dot(pooled.astype(MATMUL_DTYPE), cw_ref[...],
                         preferred_element_type=jnp.float32) + cb_ref[...]  # (bt, 128)
        out_ref[...] = logits.astype(out_ref.dtype)


# ----------------------------------------------------------------------------- model
CFG = dict(vocab=100, hidden=32, heads=4, intermediate=64, layers=2,
           max_pos=16, num_labels=3, lora_r=8, lora_alpha=32)


def init_params(key, cfg):
    H, I, r, L = cfg["hidden"], cfg["intermediate"], cfg["lora_r"], cfg["layers"]
    keys = iter(jax.random.split(key, 256))

    def nrm(shape, std=0.02):
        return jax.random.normal(next(keys), shape, jnp.float32) * std

    params = {
        "word_emb": nrm((cfg["vocab"], H)),
        "pos_emb": nrm((cfg["max_pos"], H)),
        "tok_emb": nrm((2, H)),
        "emb_ln_g": jnp.ones((H,), jnp.float32),
        "emb_ln_b": jnp.zeros((H,), jnp.float32),
        "pooler_w": nrm((H, H)), "pooler_b": jnp.zeros((H,), jnp.float32),
        "cls_w": nrm((H, cfg["num_labels"])),
        "cls_b": jnp.zeros((cfg["num_labels"],), jnp.float32),
        "layers": [],
    }
    for _ in range(L):
        params["layers"].append({
            "wq": nrm((H, H)), "bq": jnp.zeros((H,), jnp.float32),
            "wk": nrm((H, H)), "bk": jnp.zeros((H,), jnp.float32),
            "wv": nrm((H, H)), "bv": jnp.zeros((H,), jnp.float32),
            # PEFT init: A ~ normal, B = zeros
            "q_la": nrm((H, r), 0.1), "q_lb": jnp.zeros((r, H), jnp.float32),
            "v_la": nrm((H, r), 0.1), "v_lb": jnp.zeros((r, H), jnp.float32),
            "wo": nrm((H, H)), "bo": jnp.zeros((H,), jnp.float32),
            "ln1_g": jnp.ones((H,), jnp.float32), "ln1_b": jnp.zeros((H,), jnp.float32),
            "wi": nrm((H, I)), "bi": jnp.zeros((I,), jnp.float32),
            "wo2": nrm((I, H)), "bo2": jnp.zeros((H,), jnp.float32),
            "ln2_g": jnp.ones((H,), jnp.float32), "ln2_b": jnp.zeros((H,), jnp.float32),
        })
    return params


def bert_expert_forward(params, input_ids, attention_mask, cfg=CFG):
    B, S = input_ids.shape
    H, nh, L, NL = cfg["hidden"], cfg["heads"], cfg["layers"], cfg["num_labels"]
    hd = H // nh
    lora_scale = cfg["lora_alpha"] / cfg["lora_r"]
    attn_scale = 1.0 / float(hd) ** 0.5
    w_dt = MATMUL_DTYPE

    # ---- embeddings (gather = XLA glue; LayerNorm runs inside the kernel)
    x = (jnp.take(params["word_emb"], input_ids, axis=0)
         + params["pos_emb"][:S][None, :, :]
         + params["tok_emb"][0][None, None, :])                           # (B, S, H) f32

    # ---- BERT-style additive attention mask, (B, 1, S)
    mask_add = ((1.0 - attention_mask.astype(jnp.float32)) * -1e9).reshape(B, 1, S)

    # ---- fold LoRA delta and 1/sqrt(hd) into Wq/bq, LoRA into Wv; merge Q|K|V; stack (L, ...)
    wqkv_l, bqkv_l = [], []
    for lyr in params["layers"]:
        wq_eff = (lyr["wq"] + lora_scale * (lyr["q_la"] @ lyr["q_lb"])) * attn_scale
        bq_eff = lyr["bq"] * attn_scale
        wv_eff = lyr["wv"] + lora_scale * (lyr["v_la"] @ lyr["v_lb"])
        wqkv_l.append(jnp.concatenate([wq_eff, lyr["wk"], wv_eff], axis=1))   # (H, 3H)
        bqkv_l.append(jnp.concatenate([bq_eff, lyr["bk"], lyr["bv"]]))        # (3H,)
    wqkv = jnp.stack(wqkv_l).astype(w_dt)                                  # (L, H, 3H) bf16
    bqkv = jnp.stack(bqkv_l)[:, None, :]                                   # (L, 1, 3H) f32
    wo   = jnp.stack([l["wo"]  for l in params["layers"]]).astype(w_dt)    # (L, H, H)
    bo   = jnp.stack([l["bo"]  for l in params["layers"]])[:, None, :]
    ln1g = jnp.stack([l["ln1_g"] for l in params["layers"]])[:, None, :]
    ln1b = jnp.stack([l["ln1_b"] for l in params["layers"]])[:, None, :]
    wi   = jnp.stack([l["wi"]  for l in params["layers"]]).astype(w_dt)    # (L, H, I)
    bi   = jnp.stack([l["bi"]  for l in params["layers"]])[:, None, :]
    wo2  = jnp.stack([l["wo2"] for l in params["layers"]]).astype(w_dt)    # (L, I, H)
    bo2  = jnp.stack([l["bo2"] for l in params["layers"]])[:, None, :]
    ln2g = jnp.stack([l["ln2_g"] for l in params["layers"]])[:, None, :]
    ln2b = jnp.stack([l["ln2_b"] for l in params["layers"]])[:, None, :]

    eg = params["emb_ln_g"].reshape(1, H)
    eb = params["emb_ln_b"].reshape(1, H)
    pw = params["pooler_w"].astype(w_dt)
    pb = params["pooler_b"].reshape(1, H)
    # lane-dense classifier head: pad to 128 output lanes, slice back after the kernel
    cw = jnp.zeros((H, LANE), jnp.float32).at[:, :NL].set(params["cls_w"]).astype(w_dt)
    cb = jnp.zeros((1, LANE), jnp.float32).at[:, :NL].set(params["cls_b"][None, :])

    # ---- batch tiling: pack tokens so the MXU M dimension is filled (M = bt*S per step)
    bt_target = max(1, min(B, 256 // S))
    bt = max(d for d in range(1, bt_target + 1) if B % d == 0)
    n_bt = B // bt

    kernel = functools.partial(_bert_layer_kernel,
                               num_heads=nh, eps=1e-12, bt=bt, seq_len=S)

    def _rep(a):                     # replicated (small) arrays: same block every step
        nd = a.ndim
        return pl.BlockSpec(a.shape, lambda b, l, _nd=nd: (0,) * _nd)

    def _layer(a):                   # per-layer streamed weights: block index follows l
        nd = a.ndim
        return pl.BlockSpec((1,) + a.shape[1:],
                            lambda b, l, _nd=nd: (l,) + (0,) * (_nd - 1))

    logits_pad = pl.pallas_call(
        kernel,
        grid=(n_bt, L),                               # layer axis streams weights
        in_specs=[
            pl.BlockSpec((bt, S, H), lambda b, l: (b, 0, 0)),    # embedded tokens
            pl.BlockSpec((bt, 1, S), lambda b, l: (b, 0, 0)),    # additive mask
            _rep(eg), _rep(eb),
            _layer(wqkv), _layer(bqkv), _layer(wo), _layer(bo),
            _layer(ln1g), _layer(ln1b),
            _layer(wi), _layer(bi), _layer(wo2), _layer(bo2),
            _layer(ln2g), _layer(ln2b),
            _rep(pw), _rep(pb), _rep(cw), _rep(cb),
        ],
        out_specs=pl.BlockSpec((bt, LANE), lambda b, l: (b, 0)),
        out_shape=jax.ShapeDtypeStruct((B, LANE), jnp.float32),
        scratch_shapes=[pltpu.VMEM((bt * S, H), jnp.float32)],   # activations carried over L
        compiler_params=pltpu.CompilerParams(
            dimension_semantics=("parallel", "arbitrary"),       # batch tiles shard across TCs
            vmem_limit_bytes=32 * 1024 * 1024),
    )(x, mask_add, eg, eb, wqkv, bqkv, wo, bo, ln1g, ln1b,
      wi, bi, wo2, bo2, ln2g, ln2b, pw, pb, cw, cb)

    return logits_pad[:, :NL]


# ----------------------------------------------------------------------------- main
if __name__ == "__main__":
    key = jax.random.PRNGKey(0)
    k_param, k_ids = jax.random.split(key)

    params = init_params(k_param, CFG)

    B, S = 2, 8
    input_ids = jax.random.randint(k_ids, (B, S), 0, CFG["vocab"], dtype=jnp.int32)
    attention_mask = jnp.array([[1, 1, 1, 1, 1, 1, 1, 1],
                                [1, 1, 1, 1, 1, 0, 0, 0]], dtype=jnp.int32)

    logits = jax.jit(bert_expert_forward)(params, input_ids, attention_mask)
    logits = jax.block_until_ready(logits)

    assert logits.shape == (B, CFG["num_labels"])
    assert bool(jnp.all(jnp.isfinite(logits)))
    print("KERNEL_OK")
</pallas_src>

<mosaic_0001>
module attributes {stable_mosaic.version = 11 : i64} {
  func.func @_bert_layer_kernel(%arg0: i32, %arg1: i32, %arg2: memref<2x8x32xf32, #tpu.memory_space<vmem>>, %arg3: memref<2x1x8xf32, #tpu.memory_space<vmem>>, %arg4: memref<1x32xf32, #tpu.memory_space<vmem>>, %arg5: memref<1x32xf32, #tpu.memory_space<vmem>>, %arg6: memref<1x32x96xbf16, #tpu.memory_space<vmem>>, %arg7: memref<1x1x96xf32, #tpu.memory_space<vmem>>, %arg8: memref<1x32x32xbf16, #tpu.memory_space<vmem>>, %arg9: memref<1x1x32xf32, #tpu.memory_space<vmem>>, %arg10: memref<1x1x32xf32, #tpu.memory_space<vmem>>, %arg11: memref<1x1x32xf32, #tpu.memory_space<vmem>>, %arg12: memref<1x32x64xbf16, #tpu.memory_space<vmem>>, %arg13: memref<1x1x64xf32, #tpu.memory_space<vmem>>, %arg14: memref<1x64x32xbf16, #tpu.memory_space<vmem>>, %arg15: memref<1x1x32xf32, #tpu.memory_space<vmem>>, %arg16: memref<1x1x32xf32, #tpu.memory_space<vmem>>, %arg17: memref<1x1x32xf32, #tpu.memory_space<vmem>>, %arg18: memref<32x32xbf16, #tpu.memory_space<vmem>>, %arg19: memref<1x32xf32, #tpu.memory_space<vmem>>, %arg20: memref<32x128xbf16, #tpu.memory_space<vmem>>, %arg21: memref<1x128xf32, #tpu.memory_space<vmem>>, %arg22: memref<2x128xf32, #tpu.memory_space<vmem>>, %arg23: memref<16x32xf32, #tpu.memory_space<vmem>>) attributes {dimension_semantics = [#tpu.dimension_semantics<parallel>, #tpu.dimension_semantics<arbitrary>], iteration_bounds = array<i64: 1, 2>, scalar_prefetch = 0 : i64, scratch_operands = 1 : i64, tpu.core_type = #tpu.core_type<tc>, window_params = [{transform_indices = @transform_0, window_bounds = array<i64: 2, 8, 32>}, {transform_indices = @transform_1, window_bounds = array<i64: 2, 1, 8>}, {pipeline_mode = #tpu.pipeline_mode<synchronous>, transform_indices = @transform_2, window_bounds = array<i64: 1, 32>}, {pipeline_mode = #tpu.pipeline_mode<synchronous>, transform_indices = @transform_3, window_bounds = array<i64: 1, 32>}, {transform_indices = @transform_4, window_bounds = array<i64: 1, 32, 96>}, {transform_indices = @transform_5, window_bounds = array<i64: 1, 1, 96>}, {transform_indices = @transform_6, window_bounds = array<i64: 1, 32, 32>}, {transform_indices = @transform_7, window_bounds = array<i64: 1, 1, 32>}, {transform_indices = @transform_8, window_bounds = array<i64: 1, 1, 32>}, {transform_indices = @transform_9, window_bounds = array<i64: 1, 1, 32>}, {transform_indices = @transform_10, window_bounds = array<i64: 1, 32, 64>}, {transform_indices = @transform_11, window_bounds = array<i64: 1, 1, 64>}, {transform_indices = @transform_12, window_bounds = array<i64: 1, 64, 32>}, {transform_indices = @transform_13, window_bounds = array<i64: 1, 1, 32>}, {transform_indices = @transform_14, window_bounds = array<i64: 1, 1, 32>}, {transform_indices = @transform_15, window_bounds = array<i64: 1, 1, 32>}, {pipeline_mode = #tpu.pipeline_mode<synchronous>, transform_indices = @transform_16, window_bounds = array<i64: 32, 32>}, {pipeline_mode = #tpu.pipeline_mode<synchronous>, transform_indices = @transform_17, window_bounds = array<i64: 1, 32>}, {pipeline_mode = #tpu.pipeline_mode<synchronous>, transform_indices = @transform_18, window_bounds = array<i64: 32, 128>}, {pipeline_mode = #tpu.pipeline_mode<synchronous>, transform_indices = @transform_19, window_bounds = array<i64: 1, 128>}, {transform_indices = @transform_20, window_bounds = array<i64: 2, 128>}]} {
    %c0_i32 = arith.constant 0 : i32
    %0 = arith.cmpi eq, %arg1, %c0_i32 : i32
    %1 = arith.extui %0 : i1 to i32
    %c0_i32_0 = arith.constant 0 : i32
    %2 = arith.cmpi ne, %1, %c0_i32_0 : i32
    scf.if %2 {
      %c0_88 = arith.constant 0 : index
      %c0_89 = arith.constant 0 : index
      %c0_90 = arith.constant 0 : index
      %223 = vector.load %arg2[%c0_88, %c0_89, %c0_90] : memref<2x8x32xf32, #tpu.memory_space<vmem>>, vector<2x8x32xf32>
      %224 = vector.shape_cast %223 : vector<2x8x32xf32> to vector<16x32xf32>
      %c0_91 = arith.constant 0 : index
      %c0_92 = arith.constant 0 : index
      %225 = vector.load %arg4[%c0_91, %c0_92] : memref<1x32xf32, #tpu.memory_space<vmem>>, vector<1x32xf32>
      %c0_93 = arith.constant 0 : index
      %c0_94 = arith.constant 0 : index
      %226 = vector.load %arg5[%c0_93, %c0_94] : memref<1x32xf32, #tpu.memory_space<vmem>>, vector<1x32xf32>
      %cst_95 = arith.constant dense<0.000000e+00> : vector<16xf32>
      %227 = vector.multi_reduction <add>, %224, %cst_95 [1] : vector<16x32xf32> to vector<16xf32>
      %228 = vector.shape_cast %227 : vector<16xf32> to vector<16x1xf32>
      %cst_96 = arith.constant 3.200000e+01 : f32
      %229 = vector.broadcast %cst_96 : f32 to vector<16x1xf32>
      %230 = arith.divf %228, %229 : vector<16x1xf32>
      %231 = vector.broadcast %230 : vector<16x1xf32> to vector<16x32xf32>
      %232 = arith.subf %224, %231 : vector<16x32xf32>
      %233 = arith.mulf %232, %232 : vector<16x32xf32>
      %cst_97 = arith.constant dense<0.000000e+00> : vector<16xf32>
      %234 = vector.multi_reduction <add>, %233, %cst_97 [1] : vector<16x32xf32> to vector<16xf32>
      %235 = vector.shape_cast %234 : vector<16xf32> to vector<16x1xf32>
      %cst_98 = arith.constant 3.200000e+01 : f32
      %236 = vector.broadcast %cst_98 : f32 to vector<16x1xf32>
      %237 = arith.divf %235, %236 : vector<16x1xf32>
      %cst_99 = arith.constant 9.99999996E-13 : f32
      %238 = vector.broadcast %cst_99 : f32 to vector<16x1xf32>
      %239 = arith.addf %237, %238 : vector<16x1xf32>
      %240 = math.rsqrt %239 : vector<16x1xf32>
      %241 = vector.broadcast %240 : vector<16x1xf32> to vector<16x32xf32>
      %242 = arith.mulf %232, %241 : vector<16x32xf32>
      %243 = vector.broadcast %225 : vector<1x32xf32> to vector<16x32xf32>
      %244 = arith.mulf %242, %243 : vector<16x32xf32>
      %245 = vector.broadcast %226 : vector<1x32xf32> to vector<16x32xf32>
      %246 = arith.addf %244, %245 : vector<16x32xf32>
      %c0_100 = arith.constant 0 : index
      %c0_101 = arith.constant 0 : index
      %247 = vector.load %arg23[%c0_100, %c0_101] : memref<16x32xf32, #tpu.memory_space<vmem>>, vector<16x32xf32>
      tpu.vector_store %arg23[%c0_100, %c0_101], %246 {strides = array<i32>} : memref<16x32xf32, #tpu.memory_space<vmem>>, vector<16x32xf32>,
    } else {
    }
    %c0 = arith.constant 0 : index
    %c0_1 = arith.constant 0 : index
    %3 = vector.load %arg23[%c0, %c0_1] : memref<16x32xf32, #tpu.memory_space<vmem>>, vector<16x32xf32>
    %c0_2 = arith.constant 0 : index
    %c0_3 = arith.constant 0 : index
    %c0_4 = arith.constant 0 : index
    %4 = vector.load %arg3[%c0_2, %c0_3, %c0_4] : memref<2x1x8xf32, #tpu.memory_space<vmem>>, vector<2x1x8xf32>
    %5 = arith.truncf %3 : vector<16x32xf32> to vector<16x32xbf16>
    %c0_5 = arith.constant 0 : index
    %c0_6 = arith.constant 0 : index
    %c0_7 = arith.constant 0 : index
    %6 = vector.load %arg6[%c0_5, %c0_6, %c0_7] : memref<1x32x96xbf16, #tpu.memory_space<vmem>>, vector<1x32x96xbf16>
    %7 = vector.shape_cast %6 : vector<1x32x96xbf16> to vector<32x96xbf16>
    %cst = arith.constant dense<0.000000e+00> : vector<16x96xf32>
    %8 = tpu.matmul %5, %7, %cst {dimension_numbers = #tpu.dot_dimension_numbers<[1], [0], [0], [1], [0, 0, 1, 1], [], []>} : vector<16x32xbf16>, vector<32x96xbf16>, vector<16x96xf32> -> vector<16x96xf32>
    %c0_8 = arith.constant 0 : index
    %c0_9 = arith.constant 0 : index
    %c0_10 = arith.constant 0 : index
    %9 = vector.load %arg7[%c0_8, %c0_9, %c0_10] : memref<1x1x96xf32, #tpu.memory_space<vmem>>, vector<1x1x96xf32>
    %10 = vector.shape_cast %9 : vector<1x1x96xf32> to vector<1x96xf32>
    %11 = vector.broadcast %10 : vector<1x96xf32> to vector<16x96xf32>
    %12 = arith.addf %8, %11 : vector<16x96xf32>
    %13 = vector.extract_strided_slice %12 {offsets = [0, 0], sizes = [16, 32], strides = [1, 1]} : vector<16x96xf32> to vector<16x32xf32>
    %14 = vector.shape_cast %13 : vector<16x32xf32> to vector<2x8x32xf32>
    %15 = vector.extract_strided_slice %12 {offsets = [0, 32], sizes = [16, 32], strides = [1, 1]} : vector<16x96xf32> to vector<16x32xf32>
    %16 = vector.shape_cast %15 : vector<16x32xf32> to vector<2x8x32xf32>
    %17 = vector.extract_strided_slice %12 {offsets = [0, 64], sizes = [16, 32], strides = [1, 1]} : vector<16x96xf32> to vector<16x32xf32>
    %18 = vector.shape_cast %17 : vector<16x32xf32> to vector<2x8x32xf32>
    %19 = vector.extract_strided_slice %14 {offsets = [0, 0, 0], sizes = [2, 8, 8], strides = [1, 1, 1]} : vector<2x8x32xf32> to vector<2x8x8xf32>
    %20 = arith.truncf %19 : vector<2x8x8xf32> to vector<2x8x8xbf16>
    %21 = vector.extract_strided_slice %16 {offsets = [0, 0, 0], sizes = [2, 8, 8], strides = [1, 1, 1]} : vector<2x8x32xf32> to vector<2x8x8xf32>
    %22 = arith.truncf %21 : vector<2x8x8xf32> to vector<2x8x8xbf16>
    %23 = vector.extract_strided_slice %18 {offsets = [0, 0, 0], sizes = [2, 8, 8], strides = [1, 1, 1]} : vector<2x8x32xf32> to vector<2x8x8xf32>
    %24 = arith.truncf %23 : vector<2x8x8xf32> to vector<2x8x8xbf16>
    "tpu.trace_start"() <{level = 10 : i32, message = "bqd,bkd->bqk"}> : () -> ()
    %cst_11 = arith.constant dense<0.000000e+00> : vector<2x8x8xf32>
    %25 = tpu.matmul %20, %22, %cst_11 {dimension_numbers = #tpu.dot_dimension_numbers<[2], [2], [1], [1], [0, 0, 0, 1, 1, 1], [0], [0]>} : vector<2x8x8xbf16>, vector<2x8x8xbf16>, vector<2x8x8xf32> -> vector<2x8x8xf32>
    "tpu.trace_stop"() : () -> ()
    %26 = vector.broadcast %4 : vector<2x1x8xf32> to vector<2x8x8xf32>
    %27 = arith.addf %25, %26 : vector<2x8x8xf32>
    %cst_12 = arith.constant dense<0xFF800000> : vector<2x8xf32>
    %28 = vector.multi_reduction <maximumf>, %27, %cst_12 [2] : vector<2x8x8xf32> to vector<2x8xf32>
    %29 = vector.shape_cast %28 : vector<2x8xf32> to vector<2x8x1xf32>
    %30 = vector.broadcast %29 : vector<2x8x1xf32> to vector<2x8x8xf32>
    %31 = arith.subf %27, %30 : vector<2x8x8xf32>
    %32 = math.exp %31 : vector<2x8x8xf32>
    %cst_13 = arith.constant dense<0.000000e+00> : vector<2x8xf32>
    %33 = vector.multi_reduction <add>, %32, %cst_13 [2] : vector<2x8x8xf32> to vector<2x8xf32>
    %34 = vector.shape_cast %33 : vector<2x8xf32> to vector<2x8x1xf32>
    %35 = tpu.reciprocal %34 {approx = true} : vector<2x8x1xf32> -> vector<2x8x1xf32>
    %36 = vector.broadcast %35 : vector<2x8x1xf32> to vector<2x8x8xf32>
    %37 = arith.mulf %32, %36 : vector<2x8x8xf32>
    %38 = arith.truncf %37 : vector<2x8x8xf32> to vector<2x8x8xbf16>
    "tpu.trace_start"() <{level = 10 : i32, message = "bqk,bkd->bqd"}> : () -> ()
    %cst_14 = arith.constant dense<0.000000e+00> : vector<2x8x8xf32>
    %39 = tpu.matmul %38, %24, %cst_14 {dimension_numbers = #tpu.dot_dimension_numbers<[2], [1], [1], [2], [0, 0, 0, 1, 1, 2], [0], [0]>} : vector<2x8x8xbf16>, vector<2x8x8xbf16>, vector<2x8x8xf32> -> vector<2x8x8xf32>
    "tpu.trace_stop"() : () -> ()
    %40 = vector.extract_strided_slice %14 {offsets = [0, 0, 8], sizes = [2, 8, 8], strides = [1, 1, 1]} : vector<2x8x32xf32> to vector<2x8x8xf32>
    %41 = arith.truncf %40 : vector<2x8x8xf32> to vector<2x8x8xbf16>
    %42 = vector.extract_strided_slice %16 {offsets = [0, 0, 8], sizes = [2, 8, 8], strides = [1, 1, 1]} : vector<2x8x32xf32> to vector<2x8x8xf32>
    %43 = arith.truncf %42 : vector<2x8x8xf32> to vector<2x8x8xbf16>
    %44 = vector.extract_strided_slice %18 {offsets = [0, 0, 8], sizes = [2, 8, 8], strides = [1, 1, 1]} : vector<2x8x32xf32> to vector<2x8x8xf32>
    %45 = arith.truncf %44 : vector<2x8x8xf32> to vector<2x8x8xbf16>
    "tpu.trace_start"() <{level = 10 : i32, message = "bqd,bkd->bqk"}> : () -> ()
    %cst_15 = arith.constant dense<0.000000e+00> : vector<2x8x8xf32>
    %46 = tpu.matmul %41, %43, %cst_15 {dimension_numbers = #tpu.dot_dimension_numbers<[2], [2], [1], [1], [0, 0, 0, 1, 1, 1], [0], [0]>} : vector<2x8x8xbf16>, vector<2x8x8xbf16>, vector<2x8x8xf32> -> vector<2x8x8xf32>
    "tpu.trace_stop"() : () -> ()
    %47 = vector.broadcast %4 : vector<2x1x8xf32> to vector<2x8x8xf32>
    %48 = arith.addf %46, %47 : vector<2x8x8xf32>
    %cst_16 = arith.constant dense<0xFF800000> : vector<2x8xf32>
    %49 = vector.multi_reduction <maximumf>, %48, %cst_16 [2] : vector<2x8x8xf32> to vector<2x8xf32>
    %50 = vector.shape_cast %49 : vector<2x8xf32> to vector<2x8x1xf32>
    %51 = vector.broadcast %50 : vector<2x8x1xf32> to vector<2x8x8xf32>
    %52 = arith.subf %48, %51 : vector<2x8x8xf32>
    %53 = math.exp %52 : vector<2x8x8xf32>
    %cst_17 = arith.constant dense<0.000000e+00> : vector<2x8xf32>
    %54 = vector.multi_reduction <add>, %53, %cst_17 [2] : vector<2x8x8xf32> to vector<2x8xf32>
    %55 = vector.shape_cast %54 : vector<2x8xf32> to vector<2x8x1xf32>
    %56 = tpu.reciprocal %55 {approx = true} : vector<2x8x1xf32> -> vector<2x8x1xf32>
    %57 = vector.broadcast %56 : vector<2x8x1xf32> to vector<2x8x8xf32>
    %58 = arith.mulf %53, %57 : vector<2x8x8xf32>
    %59 = arith.truncf %58 : vector<2x8x8xf32> to vector<2x8x8xbf16>
    "tpu.trace_start"() <{level = 10 : i32, message = "bqk,bkd->bqd"}> : () -> ()
    %cst_18 = arith.constant dense<0.000000e+00> : vector<2x8x8xf32>
    %60 = tpu.matmul %59, %45, %cst_18 {dimension_numbers = #tpu.dot_dimension_numbers<[2], [1], [1], [2], [0, 0, 0, 1, 1, 2], [0], [0]>} : vector<2x8x8xbf16>, vector<2x8x8xbf16>, vector<2x8x8xf32> -> vector<2x8x8xf32>
    "tpu.trace_stop"() : () -> ()
    %61 = vector.extract_strided_slice %14 {offsets = [0, 0, 16], sizes = [2, 8, 8], strides = [1, 1, 1]} : vector<2x8x32xf32> to vector<2x8x8xf32>
    %62 = arith.truncf %61 : vector<2x8x8xf32> to vector<2x8x8xbf16>
    %63 = vector.extract_strided_slice %16 {offsets = [0, 0, 16], sizes = [2, 8, 8], strides = [1, 1, 1]} : vector<2x8x32xf32> to vector<2x8x8xf32>
    %64 = arith.truncf %63 : vector<2x8x8xf32> to vector<2x8x8xbf16>
    %65 = vector.extract_strided_slice %18 {offsets = [0, 0, 16], sizes = [2, 8, 8], strides = [1, 1, 1]} : vector<2x8x32xf32> to vector<2x8x8xf32>
    %66 = arith.truncf %65 : vector<2x8x8xf32> to vector<2x8x8xbf16>
    "tpu.trace_start"() <{level = 10 : i32, message = "bqd,bkd->bqk"}> : () -> ()
    %cst_19 = arith.constant dense<0.000000e+00> : vector<2x8x8xf32>
    %67 = tpu.matmul %62, %64, %cst_19 {dimension_numbers = #tpu.dot_dimension_numbers<[2], [2], [1], [1], [0, 0, 0, 1, 1, 1], [0], [0]>} : vector<2x8x8xbf16>, vector<2x8x8xbf16>, vector<2x8x8xf32> -> vector<2x8x8xf32>
    "tpu.trace_stop"() : () -> ()
    %68 = vector.broadcast %4 : vector<2x1x8xf32> to vector<2x8x8xf32>
    %69 = arith.addf %67, %68 : vector<2x8x8xf32>
    %cst_20 = arith.constant dense<0xFF800000> : vector<2x8xf32>
    %70 = vector.multi_reduction <maximumf>, %69, %cst_20 [2] : vector<2x8x8xf32> to vector<2x8xf32>
    %71 = vector.shape_cast %70 : vector<2x8xf32> to vector<2x8x1xf32>
    %72 = vector.broadcast %71 : vector<2x8x1xf32> to vector<2x8x8xf32>
    %73 = arith.subf %69, %72 : vector<2x8x8xf32>
    %74 = math.exp %73 : vector<2x8x8xf32>
    %cst_21 = arith.constant dense<0.000000e+00> : vector<2x8xf32>
    %75 = vector.multi_reduction <add>, %74, %cst_21 [2] : vector<2x8x8xf32> to vector<2x8xf32>
    %76 = vector.shape_cast %75 : vector<2x8xf32> to vector<2x8x1xf32>
    %77 = tpu.reciprocal %76 {approx = true} : vector<2x8x1xf32> -> vector<2x8x1xf32>
    %78 = vector.broadcast %77 : vector<2x8x1xf32> to vector<2x8x8xf32>
    %79 = arith.mulf %74, %78 : vector<2x8x8xf32>
    %80 = arith.truncf %79 : vector<2x8x8xf32> to vector<2x8x8xbf16>
    "tpu.trace_start"() <{level = 10 : i32, message = "bqk,bkd->bqd"}> : () -> ()
    %cst_22 = arith.constant dense<0.000000e+00> : vector<2x8x8xf32>
    %81 = tpu.matmul %80, %66, %cst_22 {dimension_numbers = #tpu.dot_dimension_numbers<[2], [1], [1], [2], [0, 0, 0, 1, 1, 2], [0], [0]>} : vector<2x8x8xbf16>, vector<2x8x8xbf16>, vector<2x8x8xf32> -> vector<2x8x8xf32>
    "tpu.trace_stop"() : () -> ()
    %82 = vector.extract_strided_slice %14 {offsets = [0, 0, 24], sizes = [2, 8, 8], strides = [1, 1, 1]} : vector<2x8x32xf32> to vector<2x8x8xf32>
    %83 = arith.truncf %82 : vector<2x8x8xf32> to vector<2x8x8xbf16>
    %84 = vector.extract_strided_slice %16 {offsets = [0, 0, 24], sizes = [2, 8, 8], strides = [1, 1, 1]} : vector<2x8x32xf32> to vector<2x8x8xf32>
    %85 = arith.truncf %84 : vector<2x8x8xf32> to vector<2x8x8xbf16>
    %86 = vector.extract_strided_slice %18 {offsets = [0, 0, 24], sizes = [2, 8, 8], strides = [1, 1, 1]} : vector<2x8x32xf32> to vector<2x8x8xf32>
    %87 = arith.truncf %86 : vector<2x8x8xf32> to vector<2x8x8xbf16>
    "tpu.trace_start"() <{level = 10 : i32, message = "bqd,bkd->bqk"}> : () -> ()
    %cst_23 = arith.constant dense<0.000000e+00> : vector<2x8x8xf32>
    %88 = tpu.matmul %83, %85, %cst_23 {dimension_numbers = #tpu.dot_dimension_numbers<[2], [2], [1], [1], [0, 0, 0, 1, 1, 1], [0], [0]>} : vector<2x8x8xbf16>, vector<2x8x8xbf16>, vector<2x8x8xf32> -> vector<2x8x8xf32>
    "tpu.trace_stop"() : () -> ()
    %89 = vector.broadcast %4 : vector<2x1x8xf32> to vector<2x8x8xf32>
    %90 = arith.addf %88, %89 : vector<2x8x8xf32>
    %cst_24 = arith.constant dense<0xFF800000> : vector<2x8xf32>
    %91 = vector.multi_reduction <maximumf>, %90, %cst_24 [2] : vector<2x8x8xf32> to vector<2x8xf32>
    %92 = vector.shape_cast %91 : vector<2x8xf32> to vector<2x8x1xf32>
    %93 = vector.broadcast %92 : vector<2x8x1xf32> to vector<2x8x8xf32>
    %94 = arith.subf %90, %93 : vector<2x8x8xf32>
    %95 = math.exp %94 : vector<2x8x8xf32>
    %cst_25 = arith.constant dense<0.000000e+00> : vector<2x8xf32>
    %96 = vector.multi_reduction <add>, %95, %cst_25 [2] : vector<2x8x8xf32> to vector<2x8xf32>
    %97 = vector.shape_cast %96 : vector<2x8xf32> to vector<2x8x1xf32>
    %98 = tpu.reciprocal %97 {approx = true} : vector<2x8x1xf32> -> vector<2x8x1xf32>
    %99 = vector.broadcast %98 : vector<2x8x1xf32> to vector<2x8x8xf32>
    %100 = arith.mulf %95, %99 : vector<2x8x8xf32>
    %101 = arith.truncf %100 : vector<2x8x8xf32> to vector<2x8x8xbf16>
    "tpu.trace_start"() <{level = 10 : i32, message = "bqk,bkd->bqd"}> : () -> ()
    %cst_26 = arith.constant dense<0.000000e+00> : vector<2x8x8xf32>
    %102 = tpu.matmul %101, %87, %cst_26 {dimension_numbers = #tpu.dot_dimension_numbers<[2], [1], [1], [2], [0, 0, 0, 1, 1, 2], [0], [0]>} : vector<2x8x8xbf16>, vector<2x8x8xbf16>, vector<2x8x8xf32> -> vector<2x8x8xf32>
    "tpu.trace_stop"() : () -> ()
    %103 = tpu.concatenate %39, %60, %81, %102 in 2 : vector<2x8x8xf32>, vector<2x8x8xf32>, vector<2x8x8xf32>, vector<2x8x8xf32> -> vector<2x8x32xf32>
    %104 = vector.shape_cast %103 : vector<2x8x32xf32> to vector<16x32xf32>
    %105 = arith.truncf %104 : vector<16x32xf32> to vector<16x32xbf16>
    %c0_27 = arith.constant 0 : index
    %c0_28 = arith.constant 0 : index
    %c0_29 = arith.constant 0 : index
    %106 = vector.load %arg8[%c0_27, %c0_28, %c0_29] : memref<1x32x32xbf16, #tpu.memory_space<vmem>>, vector<1x32x32xbf16>
    %107 = vector.shape_cast %106 : vector<1x32x32xbf16> to vector<32x32xbf16>
    %cst_30 = arith.constant dense<0.000000e+00> : vector<16x32xf32>
    %108 = tpu.matmul %105, %107, %cst_30 {dimension_numbers = #tpu.dot_dimension_numbers<[1], [0], [0], [1], [0, 0, 1, 1], [], []>} : vector<16x32xbf16>, vector<32x32xbf16>, vector<16x32xf32> -> vector<16x32xf32>
    %c0_31 = arith.constant 0 : index
    %c0_32 = arith.constant 0 : index
    %c0_33 = arith.constant 0 : index
    %109 = vector.load %arg9[%c0_31, %c0_32, %c0_33] : memref<1x1x32xf32, #tpu.memory_space<vmem>>, vector<1x1x32xf32>
    %110 = vector.shape_cast %109 : vector<1x1x32xf32> to vector<1x32xf32>
    %111 = vector.broadcast %110 : vector<1x32xf32> to vector<16x32xf32>
    %112 = arith.addf %108, %111 : vector<16x32xf32>
    %113 = arith.addf %3, %112 : vector<16x32xf32>
    %c0_34 = arith.constant 0 : index
    %c0_35 = arith.constant 0 : index
    %c0_36 = arith.constant 0 : index
    %114 = vector.load %arg10[%c0_34, %c0_35, %c0_36] : memref<1x1x32xf32, #tpu.memory_space<vmem>>, vector<1x1x32xf32>
    %115 = vector.shape_cast %114 : vector<1x1x32xf32> to vector<1x32xf32>
    %c0_37 = arith.constant 0 : index
    %c0_38 = arith.constant 0 : index
    %c0_39 = arith.constant 0 : index
    %116 = vector.load %arg11[%c0_37, %c0_38, %c0_39] : memref<1x1x32xf32, #tpu.memory_space<vmem>>, vector<1x1x32xf32>
    %117 = vector.shape_cast %116 : vector<1x1x32xf32> to vector<1x32xf32>
    %cst_40 = arith.constant dense<0.000000e+00> : vector<16xf32>
    %118 = vector.multi_reduction <add>, %113, %cst_40 [1] : vector<16x32xf32> to vector<16xf32>
    %119 = vector.shape_cast %118 : vector<16xf32> to vector<16x1xf32>
    %cst_41 = arith.constant 3.200000e+01 : f32
    %120 = vector.broadcast %cst_41 : f32 to vector<16x1xf32>
    %121 = arith.divf %119, %120 : vector<16x1xf32>
    %122 = vector.broadcast %121 : vector<16x1xf32> to vector<16x32xf32>
    %123 = arith.subf %113, %122 : vector<16x32xf32>
    %124 = arith.mulf %123, %123 : vector<16x32xf32>
    %cst_42 = arith.constant dense<0.000000e+00> : vector<16xf32>
    %125 = vector.multi_reduction <add>, %124, %cst_42 [1] : vector<16x32xf32> to vector<16xf32>
    %126 = vector.shape_cast %125 : vector<16xf32> to vector<16x1xf32>
    %cst_43 = arith.constant 3.200000e+01 : f32
    %127 = vector.broadcast %cst_43 : f32 to vector<16x1xf32>
    %128 = arith.divf %126, %127 : vector<16x1xf32>
    %cst_44 = arith.constant 9.99999996E-13 : f32
    %129 = vector.broadcast %cst_44 : f32 to vector<16x1xf32>
    %130 = arith.addf %128, %129 : vector<16x1xf32>
    %131 = math.rsqrt %130 : vector<16x1xf32>
    %132 = vector.broadcast %131 : vector<16x1xf32> to vector<16x32xf32>
    %133 = arith.mulf %123, %132 : vector<16x32xf32>
    %134 = vector.broadcast %115 : vector<1x32xf32> to vector<16x32xf32>
    %135 = arith.mulf %133, %134 : vector<16x32xf32>
    %136 = vector.broadcast %117 : vector<1x32xf32> to vector<16x32xf32>
    %137 = arith.addf %135, %136 : vector<16x32xf32>
    %138 = arith.truncf %137 : vector<16x32xf32> to vector<16x32xbf16>
    %c0_45 = arith.constant 0 : index
    %c0_46 = arith.constant 0 : index
    %c0_47 = arith.constant 0 : index
    %139 = vector.load %arg12[%c0_45, %c0_46, %c0_47] : memref<1x32x64xbf16, #tpu.memory_space<vmem>>, vector<1x32x64xbf16>
    %140 = vector.shape_cast %139 : vector<1x32x64xbf16> to vector<32x64xbf16>
    %cst_48 = arith.constant dense<0.000000e+00> : vector<16x64xf32>
    %141 = tpu.matmul %138, %140, %cst_48 {dimension_numbers = #tpu.dot_dimension_numbers<[1], [0], [0], [1], [0, 0, 1, 1], [], []>} : vector<16x32xbf16>, vector<32x64xbf16>, vector<16x64xf32> -> vector<16x64xf32>
    %c0_49 = arith.constant 0 : index
    %c0_50 = arith.constant 0 : index
    %c0_51 = arith.constant 0 : index
    %142 = vector.load %arg13[%c0_49, %c0_50, %c0_51] : memref<1x1x64xf32, #tpu.memory_space<vmem>>, vector<1x1x64xf32>
    %143 = vector.shape_cast %142 : vector<1x1x64xf32> to vector<1x64xf32>
    %144 = vector.broadcast %143 : vector<1x64xf32> to vector<16x64xf32>
    %145 = arith.addf %141, %144 : vector<16x64xf32>
    %cst_52 = arith.constant 5.000000e-01 : f32
    %146 = vector.broadcast %cst_52 : f32 to vector<16x64xf32>
    %147 = arith.mulf %146, %145 : vector<16x64xf32>
    %cst_53 = arith.constant 0.707106769 : f32
    %148 = vector.broadcast %cst_53 : f32 to vector<16x64xf32>
    %149 = arith.mulf %145, %148 : vector<16x64xf32>
    %cst_54 = arith.constant 0.000000e+00 : f32
    %150 = vector.broadcast %cst_54 : f32 to vector<16x64xf32>
    %151 = arith.cmpf oge, %149, %150 : vector<16x64xf32>
    %cst_55 = arith.constant 1.000000e+00 : f32
    %cst_56 = arith.constant -1.000000e+00 : f32
    %152 = vector.broadcast %cst_55 : f32 to vector<16x64xf32>
    %153 = vector.broadcast %cst_56 : f32 to vector<16x64xf32>
    %154 = arith.select %151, %152, %153 : vector<16x64xi1>, vector<16x64xf32>
    %155 = math.absf %149 : vector<16x64xf32>
    %cst_57 = arith.constant 0.327591091 : f32
    %156 = vector.broadcast %cst_57 : f32 to vector<16x64xf32>
    %157 = arith.mulf %156, %155 : vector<16x64xf32>
    %cst_58 = arith.constant 1.000000e+00 : f32
    %158 = vector.broadcast %cst_58 : f32 to vector<16x64xf32>
    %159 = arith.addf %158, %157 : vector<16x64xf32>
    %160 = tpu.reciprocal %159 {approx = true} : vector<16x64xf32> -> vector<16x64xf32>
    %cst_59 = arith.constant 1.06140542 : f32
    %161 = vector.broadcast %cst_59 : f32 to vector<16x64xf32>
    %162 = arith.mulf %161, %160 : vector<16x64xf32>
    %cst_60 = arith.constant -1.45315206 : f32
    %163 = vector.broadcast %cst_60 : f32 to vector<16x64xf32>
    %164 = arith.addf %162, %163 : vector<16x64xf32>
    %165 = arith.mulf %164, %160 : vector<16x64xf32>
    %cst_61 = arith.constant 1.42141378 : f32
    %166 = vector.broadcast %cst_61 : f32 to vector<16x64xf32>
    %167 = arith.addf %165, %166 : vector<16x64xf32>
    %168 = arith.mulf %167, %160 : vector<16x64xf32>
    %cst_62 = arith.constant -0.284496725 : f32
    %169 = vector.broadcast %cst_62 : f32 to vector<16x64xf32>
    %170 = arith.addf %168, %169 : vector<16x64xf32>
    %171 = arith.mulf %170, %160 : vector<16x64xf32>
    %cst_63 = arith.constant 0.254829586 : f32
    %172 = vector.broadcast %cst_63 : f32 to vector<16x64xf32>
    %173 = arith.addf %171, %172 : vector<16x64xf32>
    %174 = arith.mulf %173, %160 : vector<16x64xf32>
    %cst_64 = arith.constant 0.000000e+00 : f32
    %175 = vector.broadcast %cst_64 : f32 to vector<16x64xf32>
    %176 = arith.subf %175, %155 : vector<16x64xf32>
    %177 = arith.mulf %176, %155 : vector<16x64xf32>
    %178 = math.exp %177 : vector<16x64xf32>
    %179 = arith.mulf %174, %178 : vector<16x64xf32>
    %cst_65 = arith.constant 1.000000e+00 : f32
    %180 = vector.broadcast %cst_65 : f32 to vector<16x64xf32>
    %181 = arith.subf %180, %179 : vector<16x64xf32>
    %182 = arith.mulf %154, %181 : vector<16x64xf32>
    %cst_66 = arith.constant 1.000000e+00 : f32
    %183 = vector.broadcast %cst_66 : f32 to vector<16x64xf32>
    %184 = arith.addf %183, %182 : vector<16x64xf32>
    %185 = arith.mulf %147, %184 : vector<16x64xf32>
    %186 = arith.truncf %185 : vector<16x64xf32> to vector<16x64xbf16>
    %c0_67 = arith.constant 0 : index
    %c0_68 = arith.constant 0 : index
    %c0_69 = arith.constant 0 : index
    %187 = vector.load %arg14[%c0_67, %c0_68, %c0_69] : memref<1x64x32xbf16, #tpu.memory_space<vmem>>, vector<1x64x32xbf16>
    %188 = vector.shape_cast %187 : vector<1x64x32xbf16> to vector<64x32xbf16>
    %cst_70 = arith.constant dense<0.000000e+00> : vector<16x32xf32>
    %189 = tpu.matmul %186, %188, %cst_70 {dimension_numbers = #tpu.dot_dimension_numbers<[1], [0], [0], [1], [0, 0, 1, 1], [], []>} : vector<16x64xbf16>, vector<64x32xbf16>, vector<16x32xf32> -> vector<16x32xf32>
    %c0_71 = arith.constant 0 : index
    %c0_72 = arith.constant 0 : index
    %c0_73 = arith.constant 0 : index
    %190 = vector.load %arg15[%c0_71, %c0_72, %c0_73] : memref<1x1x32xf32, #tpu.memory_space<vmem>>, vector<1x1x32xf32>
    %191 = vector.shape_cast %190 : vector<1x1x32xf32> to vector<1x32xf32>
    %192 = vector.broadcast %191 : vector<1x32xf32> to vector<16x32xf32>
    %193 = arith.addf %189, %192 : vector<16x32xf32>
    %194 = arith.addf %137, %193 : vector<16x32xf32>
    %c0_74 = arith.constant 0 : index
    %c0_75 = arith.constant 0 : index
    %c0_76 = arith.constant 0 : index
    %195 = vector.load %arg16[%c0_74, %c0_75, %c0_76] : memref<1x1x32xf32, #tpu.memory_space<vmem>>, vector<1x1x32xf32>
    %196 = vector.shape_cast %195 : vector<1x1x32xf32> to vector<1x32xf32>
    %c0_77 = arith.constant 0 : index
    %c0_78 = arith.constant 0 : index
    %c0_79 = arith.constant 0 : index
    %197 = vector.load %arg17[%c0_77, %c0_78, %c0_79] : memref<1x1x32xf32, #tpu.memory_space<vmem>>, vector<1x1x32xf32>
    %198 = vector.shape_cast %197 : vector<1x1x32xf32> to vector<1x32xf32>
    %cst_80 = arith.constant dense<0.000000e+00> : vector<16xf32>
    %199 = vector.multi_reduction <add>, %194, %cst_80 [1] : vector<16x32xf32> to vector<16xf32>
    %200 = vector.shape_cast %199 : vector<16xf32> to vector<16x1xf32>
    %cst_81 = arith.constant 3.200000e+01 : f32
    %201 = vector.broadcast %cst_81 : f32 to vector<16x1xf32>
    %202 = arith.divf %200, %201 : vector<16x1xf32>
    %203 = vector.broadcast %202 : vector<16x1xf32> to vector<16x32xf32>
    %204 = arith.subf %194, %203 : vector<16x32xf32>
    %205 = arith.mulf %204, %204 : vector<16x32xf32>
    %cst_82 = arith.constant dense<0.000000e+00> : vector<16xf32>
    %206 = vector.multi_reduction <add>, %205, %cst_82 [1] : vector<16x32xf32> to vector<16xf32>
    %207 = vector.shape_cast %206 : vector<16xf32> to vector<16x1xf32>
    %cst_83 = arith.constant 3.200000e+01 : f32
    %208 = vector.broadcast %cst_83 : f32 to vector<16x1xf32>
    %209 = arith.divf %207, %208 : vector<16x1xf32>
    %cst_84 = arith.constant 9.99999996E-13 : f32
    %210 = vector.broadcast %cst_84 : f32 to vector<16x1xf32>
    %211 = arith.addf %209, %210 : vector<16x1xf32>
    %212 = math.rsqrt %211 : vector<16x1xf32>
    %213 = vector.broadcast %212 : vector<16x1xf32> to vector<16x32xf32>
    %214 = arith.mulf %204, %213 : vector<16x32xf32>
    %215 = vector.broadcast %196 : vector<1x32xf32> to vector<16x32xf32>
    %216 = arith.mulf %214, %215 : vector<16x32xf32>
    %217 = vector.broadcast %198 : vector<1x32xf32> to vector<16x32xf32>
    %218 = arith.addf %216, %217 : vector<16x32xf32>
    %c0_85 = arith.constant 0 : index
    %c0_86 = arith.constant 0 : index
    %219 = vector.load %arg23[%c0_85, %c0_86] : memref<16x32xf32, #tpu.memory_space<vmem>>, vector<16x32xf32>
    tpu.vector_store %arg23[%c0_85, %c0_86], %218 {strides = array<i32>} : memref<16x32xf32, #tpu.memory_space<vmem>>, vector<16x32xf32>,
    %c1_i32 = arith.constant 1 : i32
    %220 = arith.cmpi eq, %arg1, %c1_i32 : i32
    %221 = arith.extui %220 : i1 to i32
    %c0_i32_87 = arith.constant 0 : i32
    %222 = arith.cmpi ne, %221, %c0_i32_87 : i32
    scf.if %222 {
      %223 = vector.shape_cast %218 : vector<16x32xf32> to vector<2x8x32xf32>
      %224 = vector.extract_strided_slice %223 {offsets = [0, 0, 0], sizes = [2, 1, 32], strides = [1, 1, 1]} : vector<2x8x32xf32> to vector<2x1x32xf32>
      %225 = vector.shape_cast %224 : vector<2x1x32xf32> to vector<2x32xf32>
      %226 = arith.truncf %225 : vector<2x32xf32> to vector<2x32xbf16>
      %c0_88 = arith.constant 0 : index
      %c0_89 = arith.constant 0 : index
      %227 = vector.load %arg18[%c0_88, %c0_89] : memref<32x32xbf16, #tpu.memory_space<vmem>>, vector<32x32xbf16>
      %cst_90 = arith.constant dense<0.000000e+00> : vector<2x32xf32>
      %228 = tpu.matmul %226, %227, %cst_90 {dimension_numbers = #tpu.dot_dimension_numbers<[1], [0], [0], [1], [0, 0, 1, 1], [], []>} : vector<2x32xbf16>, vector<32x32xbf16>, vector<2x32xf32> -> vector<2x32xf32>
      %c0_91 = arith.constant 0 : index
      %c0_92 = arith.constant 0 : index
      %229 = vector.load %arg19[%c0_91, %c0_92] : memref<1x32xf32, #tpu.memory_space<vmem>>, vector<1x32xf32>
      %230 = vector.broadcast %229 : vector<1x32xf32> to vector<2x32xf32>
      %231 = arith.addf %228, %230 : vector<2x32xf32>
      %232 = math.tanh %231 : vector<2x32xf32>
      %233 = arith.truncf %232 : vector<2x32xf32> to vector<2x32xbf16>
      %c0_93 = arith.constant 0 : index
      %c0_94 = arith.constant 0 : index
      %234 = vector.load %arg20[%c0_93, %c0_94] : memref<32x128xbf16, #tpu.memory_space<vmem>>, vector<32x128xbf16>
      %cst_95 = arith.constant dense<0.000000e+00> : vector<2x128xf32>
      %235 = tpu.matmul %233, %234, %cst_95 {dimension_numbers = #tpu.dot_dimension_numbers<[1], [0], [0], [1], [0, 0, 1, 1], [], []>} : vector<2x32xbf16>, vector<32x128xbf16>, vector<2x128xf32> -> vector<2x128xf32>
      %c0_96 = arith.constant 0 : index
      %c0_97 = arith.constant 0 : index
      %236 = vector.load %arg21[%c0_96, %c0_97] : memref<1x128xf32, #tpu.memory_space<vmem>>, vector<1x128xf32>
      %237 = vector.broadcast %236 : vector<1x128xf32> to vector<2x128xf32>
      %238 = arith.addf %235, %237 : vector<2x128xf32>
      %c0_98 = arith.constant 0 : index
      %c0_99 = arith.constant 0 : index
      %239 = vector.load %arg22[%c0_98, %c0_99] : memref<2x128xf32, #tpu.memory_space<vmem>>, vector<2x128xf32>
      tpu.vector_store %arg22[%c0_98, %c0_99], %238 {strides = array<i32>} : memref<2x128xf32, #tpu.memory_space<vmem>>, vector<2x128xf32>,
    } else {
    }
    return
  }
  func.func @transform_0(%arg0: i32, %arg1: i32) -> (i32, i32, i32) {
    %c0_i32 = arith.constant 0 : i32
    %c0_i32_0 = arith.constant 0 : i32
    %c0_i32_1 = arith.constant 0 : i32
    return %arg0, %c0_i32, %c0_i32_0 : i32, i32, i32
  }
  func.func @transform_1(%arg0: i32, %arg1: i32) -> (i32, i32, i32) {
    %c0_i32 = arith.constant 0 : i32
    %c0_i32_0 = arith.constant 0 : i32
    %c0_i32_1 = arith.constant 0 : i32
    return %arg0, %c0_i32, %c0_i32_0 : i32, i32, i32
  }
  func.func @transform_2(%arg0: i32, %arg1: i32) -> (i32, i32) {
    %c0_i32 = arith.constant 0 : i32
    %c0_i32_0 = arith.constant 0 : i32
    %c0_i32_1 = arith.constant 0 : i32
    return %c0_i32, %c0_i32_0 : i32, i32
  }
  func.func @transform_3(%arg0: i32, %arg1: i32) -> (i32, i32) {
    %c0_i32 = arith.constant 0 : i32
    %c0_i32_0 = arith.constant 0 : i32
    %c0_i32_1 = arith.constant 0 : i32
    return %c0_i32, %c0_i32_0 : i32, i32
  }
  func.func @transform_4(%arg0: i32, %arg1: i32) -> (i32, i32, i32) {
    %c0_i32 = arith.constant 0 : i32
    %c0_i32_0 = arith.constant 0 : i32
    %c0_i32_1 = arith.constant 0 : i32
    return %arg1, %c0_i32, %c0_i32_0 : i32, i32, i32
  }
  func.func @transform_5(%arg0: i32, %arg1: i32) -> (i32, i32, i32) {
    %c0_i32 = arith.constant 0 : i32
    %c0_i32_0 = arith.constant 0 : i32
    %c0_i32_1 = arith.constant 0 : i32
    return %arg1, %c0_i32, %c0_i32_0 : i32, i32, i32
  }
  func.func @transform_6(%arg0: i32, %arg1: i32) -> (i32, i32, i32) {
    %c0_i32 = arith.constant 0 : i32
    %c0_i32_0 = arith.constant 0 : i32
    %c0_i32_1 = arith.constant 0 : i32
    return %arg1, %c0_i32, %c0_i32_0 : i32, i32, i32
  }
  func.func @transform_7(%arg0: i32, %arg1: i32) -> (i32, i32, i32) {
    %c0_i32 = arith.constant 0 : i32
    %c0_i32_0 = arith.constant 0 : i32
    %c0_i32_1 = arith.constant 0 : i32
    return %arg1, %c0_i32, %c0_i32_0 : i32, i32, i32
  }
  func.func @transform_8(%arg0: i32, %arg1: i32) -> (i32, i32, i32) {
    %c0_i32 = arith.constant 0 : i32
    %c0_i32_0 = arith.constant 0 : i32
    %c0_i32_1 = arith.constant 0 : i32
    return %arg1, %c0_i32, %c0_i32_0 : i32, i32, i32
  }
  func.func @transform_9(%arg0: i32, %arg1: i32) -> (i32, i32, i32) {
    %c0_i32 = arith.constant 0 : i32
    %c0_i32_0 = arith.constant 0 : i32
    %c0_i32_1 = arith.constant 0 : i32
    return %arg1, %c0_i32, %c0_i32_0 : i32, i32, i32
  }
  func.func @transform_10(%arg0: i32, %arg1: i32) -> (i32, i32, i32) {
    %c0_i32 = arith.constant 0 : i32
    %c0_i32_0 = arith.constant 0 : i32
    %c0_i32_1 = arith.constant 0 : i32
    return %arg1, %c0_i32, %c0_i32_0 : i32, i32, i32
  }
  func.func @transform_11(%arg0: i32, %arg1: i32) -> (i32, i32, i32) {
    %c0_i32 = arith.constant 0 : i32
    %c0_i32_0 = arith.constant 0 : i32
    %c0_i32_1 = arith.constant 0 : i32
    return %arg1, %c0_i32, %c0_i32_0 : i32, i32, i32
  }
  func.func @transform_12(%arg0: i32, %arg1: i32) -> (i32, i32, i32) {
    %c0_i32 = arith.constant 0 : i32
    %c0_i32_0 = arith.constant 0 : i32
    %c0_i32_1 = arith.constant 0 : i32
    return %arg1, %c0_i32, %c0_i32_0 : i32, i32, i32
  }
  func.func @transform_13(%arg0: i32, %arg1: i32) -> (i32, i32, i32) {
    %c0_i32 = arith.constant 0 : i32
    %c0_i32_0 = arith.constant 0 : i32
    %c0_i32_1 = arith.constant 0 : i32
    return %arg1, %c0_i32, %c0_i32_0 : i32, i32, i32
  }
  func.func @transform_14(%arg0: i32, %arg1: i32) -> (i32, i32, i32) {
    %c0_i32 = arith.constant 0 : i32
    %c0_i32_0 = arith.constant 0 : i32
    %c0_i32_1 = arith.constant 0 : i32
    return %arg1, %c0_i32, %c0_i32_0 : i32, i32, i32
  }
  func.func @transform_15(%arg0: i32, %arg1: i32) -> (i32, i32, i32) {
    %c0_i32 = arith.constant 0 : i32
    %c0_i32_0 = arith.constant 0 : i32
    %c0_i32_1 = arith.constant 0 : i32
    return %arg1, %c0_i32, %c0_i32_0 : i32, i32, i32
  }
  func.func @transform_16(%arg0: i32, %arg1: i32) -> (i32, i32) {
    %c0_i32 = arith.constant 0 : i32
    %c0_i32_0 = arith.constant 0 : i32
    %c0_i32_1 = arith.constant 0 : i32
    return %c0_i32, %c0_i32_0 : i32, i32
  }
  func.func @transform_17(%arg0: i32, %arg1: i32) -> (i32, i32) {
    %c0_i32 = arith.constant 0 : i32
    %c0_i32_0 = arith.constant 0 : i32
    %c0_i32_1 = arith.constant 0 : i32
    return %c0_i32, %c0_i32_0 : i32, i32
  }
  func.func @transform_18(%arg0: i32, %arg1: i32) -> (i32, i32) {
    %c0_i32 = arith.constant 0 : i32
    %c0_i32_0 = arith.constant 0 : i32
    %c0_i32_1 = arith.constant 0 : i32
    return %c0_i32, %c0_i32_0 : i32, i32
  }
  func.func @transform_19(%arg0: i32, %arg1: i32) -> (i32, i32) {
    %c0_i32 = arith.constant 0 : i32
    %c0_i32_0 = arith.constant 0 : i32
    %c0_i32_1 = arith.constant 0 : i32
    return %c0_i32, %c0_i32_0 : i32, i32
  }
  func.func @transform_20(%arg0: i32, %arg1: i32) -> (i32, i32) {
    %c0_i32 = arith.constant 0 : i32
    %c0_i32_0 = arith.constant 0 : i32
    return %arg0, %c0_i32 : i32, i32
  }
}

</mosaic_0001>

<bundles_post_ra>
// kernel: bert_expert_forward.1
= control target key start
LH: loop header
LB: loop body
LE: loop exit
PB: predicated region body
PF: predicated region fallthrough
CT: control target
= control target key end

     0   :  { %s3596_s0 = inlined_call_operand.vmem [shape: f32[2,8,32], index: 0, kind: input, shape index: {}]   ;;  %s3597_s1 = inlined_call_operand.vmem [shape: f32[2,1,8], index: 1, kind: input, shape index: {}]   ;;  %s3598_s2 = inlined_call_operand.vmem [shape: f32[1,32], index: 2, kind: input, shape index: {}]   ;;  %s3599_s3 = inlined_call_operand.vmem [shape: f32[1,32], index: 3, kind: input, shape index: {}]   ;;  %s3600_s4 = inlined_call_operand.vmem [shape: bf16[2,32,96], index: 4, kind: input, shape index: {}]   ;;  %s3601_s5 = inlined_call_operand.vmem [shape: f32[2,1,96], index: 5, kind: input, shape index: {}]   ;;  %s3602_s6 = inlined_call_operand.vmem [shape: bf16[2,32,32], index: 6, kind: input, shape index: {}]   ;;  %s3603_s7 = inlined_call_operand.vmem [shape: f32[2,1,32], index: 7, kind: input, shape index: {}]   ;;  %s3604_s8 = inlined_call_operand.vmem [shape: f32[2,1,32], index: 8, kind: input, shape index: {}]   ;;  %s3605_s9 = inlined_call_operand.vmem [shape: f32[2,1,32], index: 9, kind: input, shape index: {}]   ;;  %s3606_s10 = inlined_call_operand.vmem [shape: bf16[2,32,64], index: 10, kind: input, shape index: {}]   ;;  %s3607_s11 = inlined_call_operand.vmem [shape: f32[2,1,64], index: 11, kind: input, shape index: {}]   ;;  %s3608_s12 = inlined_call_operand.vmem [shape: bf16[2,64,32], index: 12, kind: input, shape index: {}]   ;;  %s3609_s13 = inlined_call_operand.vmem [shape: f32[2,1,32], index: 13, kind: input, shape index: {}]   ;;  %s3610_s14 = inlined_call_operand.vmem [shape: f32[2,1,32], index: 14, kind: input, shape index: {}]   ;;  %s3611_s15 = inlined_call_operand.vmem [shape: f32[2,1,32], index: 15, kind: input, shape index: {}]   ;;  %s3612_s16 = inlined_call_operand.vmem [shape: bf16[32,32], index: 16, kind: input, shape index: {}]   ;;  %s3613_s17 = inlined_call_operand.vmem [shape: f32[1,32], index: 17, kind: input, shape index: {}]   ;;  %s3614_s18 = inlined_call_operand.vmem [shape: bf16[32,128], index: 18, kind: input, shape index: {}]   ;;  %s3615_s19 = inlined_call_operand.vmem [shape: f32[1,128], index: 19, kind: input, shape index: {}]   ;;  %s3616_s20 = inlined_call_operand.hbm [shape: f32[2,128], index: 20, kind: output, shape index: {}]  }
   0x1   :  { %3623 = sst [smem:[#allocation9_spill]] %s3596_s0 }
   0x2   :  { %3624 = sst [smem:[#allocation10_spill]] %s3597_s1 }
   0x3   :  { %3625 = sst [smem:[#allocation11_spill]] %s3598_s2 }
   0x4   :  { %3626 = sst [smem:[#allocation12_spill]] %s3599_s3 }
   0x5   :  { %3627 = sst [smem:[#allocation13_spill]] %s3600_s4 }
   0x6   :  { %3628 = sst [smem:[#allocation14_spill]] %s3602_s6 }
   0x7   :  { %3629 = sst [smem:[#allocation15_spill]] %s3612_s16 }
   0x8   :  { %3630 = sst [smem:[#allocation16_spill]] %s3613_s17 }
   0x9   :  { %3631 = sst [smem:[#allocation17_spill]] %s3614_s18 }
   0xa   :  { %3632 = sst [smem:[#allocation18_spill]] %s3615_s19 }
   0xb   :  { %3633 = sst [smem:[#allocation19_spill]] %s3616_s20 }
   0xc   :  { %25 = vsyncpa [#allocation4], 0  ;;  %s3195_s1 = smov 0   ;;  %s3197_s22 = smov 0  }
   0xd   :  { %s3199_s23 = smov 0  }
   0xe LB: > { %3634 = sst [smem:[#allocation6_spill]] %s3064_s22  ;;  %s40_s2 = sadd.s32 1, %s3064_s22  ;;  %s3068_s23 = sphi %s3199_s23, %s31_s23   ;;  %s3064_s22 = sphi %s3197_s22, %s3657_s22   ;;  %s3060_s1 = sphi %s3195_s1, %s3656_s1  }
   0xf   : > { %3635 = sst [smem:[#allocation7_spill]] %s3068_s23  ;;  %p41_p0 = scmp.ge.s32.totalorder %s40_s2, 2 }
  0x10   : > { %p2616_p1 = scmp.ge.s32.totalorder %s3068_s23, 1  ;;  %p690_p2 = scmp.lt.s32.totalorder %s3068_s23, 3 }
  0x11   : > { %s3659_s2 = smov (%p41_p0, %s40_s2), 0 }
  0x12   : > { %3636 = sst [smem:[#allocation8_spill]] %s3659_s2  ;;  %p691_p3 = pnand %p2616_p1, %p690_p2 }
  0x13   : > { %p802_p4 = scmp.lt.s32.totalorder (!%p691_p3), %s3060_s1, 1  ;;  %s3637_s30 = sld [smem:[#allocation13_spill]] (!%p691_p3) }
  0x14   : > { %694 = sbr.rel (%p691_p3) target bundleno = 4775 (0x12a7), region = 100  ;;  %s3638_s6 = sld [smem:[#allocation14_spill]] (!%p691_p3) }
  0x15   : > { %p2625_p5 = scmp.ne.s32.totalorder (!%p691_p3), %s3060_s1, 0 }
  0x19   : > { %s3218_s25 = scalar_select %p802_p4, %s3060_s1, 1 }
  0x1a   : > { %s3639_s20 = sld [smem:[#allocation9_spill]] (!%p2625_p5) }
  0x1b   : > { %s2681_s3 = sshll.u32 %s3218_s25, 4  ;;  %s2684_s16 = sshll.u32 %s3218_s25, 5 }
  0x1c   : > { %s3228_s0 = scalar_lea.vmem %s3637_s30, %s2681_s3  ;;  %s3233_s2 = scalar_lea.vmem %s3638_s6, %s2681_s3 }
  0x1d   : > { %s3250_s30 = scalar_lea.vmem %s3606_s10, %s2681_s3  ;;  %s831_s6 = scalar_lea.vmem %s3607_s11, %s3218_s25 }
  0x1e   : > { %s3260_s23 = scalar_lea.vmem %s3608_s12, %s2684_s16  ;;  %s839_s26 = scalar_lea.vmem %s3609_s13, %s3218_s25 }
  0x1f   : > { %s842_s4 = scalar_lea.vmem %s3610_s14, %s3218_s25  ;;  %s845_s18 = scalar_lea.vmem %s3611_s15, %s3218_s25 }
  0x20   : > { %850 = sbr.rel (%p2625_p5) target bundleno = 351 (0x15f), region = 104  ;;  %s3640_s19 = sld [smem:[#allocation11_spill]] (!%p2625_p5) }
  0x21   : > { %s3641_s29 = sld [smem:[#allocation12_spill]] (!%p2625_p5) }
  0x25   : > { %v851_v0 = vld [vmem:[%s3639_s20] sm:$0xff]  ;;  %vm855_vm0 = vcmask 261120   ;;  %v852_v1 = vld [vmem:[%s3639_s20 + $0x8] sm:$0xff] }
  0x26   : > { %v856_v2 = vsel %vm855_vm0, %v851_v0, 0.0  ;;  %v859_v3 = vsel %vm855_vm0, %v852_v1, 0.0  ;;  %v2626_v21 = vld [vmem:[%s3640_s19] ss:$0 sm:$0xff] }
  0x27   : > { %857 = vadd.xlane.f32.xlu0 %v856_v2  ;;  %v2627_v23 = vld [vmem:[%s3641_s29] ss:$0 sm:$0xff] }
  0x2b   : > { %860 = vadd.xlane.f32.xlu0 %v859_v3 }
  0xb0   : > { %v858_v4 = vpop.xlane.xlu0 %857 }
  0xb1   : > { %v863_v5 = vmul.f32 0.03125, %v858_v4 }
  0xb3   : > { %v865_v6 = vsub.f32 %v851_v0, %v863_v5 }
  0xb4   : > { %v861_v7 = vpop.xlane.xlu0 %860 }
  0xb5   : > { %v864_v8 = vmul.f32 0.03125, %v861_v7  ;;  %v867_v9 = vmul.f32 %v865_v6, %v865_v6 }
  0xb7   : > { %v866_v10 = vsub.f32 %v852_v1, %v864_v8  ;;  %v869_v11 = vsel %vm855_vm0, %v867_v9, 0.0 }
  0xb8   : > { %870 = vadd.xlane.f32.xlu1 %v869_v11 }
  0xb9   : > { %v868_v12 = vmul.f32 %v866_v10, %v866_v10 }
  0xbb   : > { %v872_v13 = vsel %vm855_vm0, %v868_v12, 0.0 }
  0xbc   : > { %873 = vadd.xlane.f32.xlu1 %v872_v13 }
 0x141   : > { %v871_v14 = vpop.xlane.xlu1 %870 }
 0x142   : > { %v875_v15 = vmul.f32 0.03125, %v871_v14 }
 0x144   : > { %v877_v16 = vadd.f32 1e-12, %v875_v15 }
 0x145   : > { %v874_v17 = vpop.xlane.xlu1 %873 }
 0x146   : > { %2935 = vrsqrt.f32 %v877_v16  ;;  %v876_v18 = vmul.f32 0.03125, %v874_v17 }
 0x148   : > { %v878_v19 = vadd.f32 1e-12, %v876_v18 }
 0x14a   : > { %2937 = vrsqrt.f32 %v878_v19 }
 0x153   : > { %v2936_v20 = vpop.eup %2935 }
 0x154   : > { %v881_v22 = vmul.f32 %v2936_v20, %v865_v6 }
 0x156   : > { %v889_v24 = vmul.f32 %v2626_v21, %v881_v22 }
 0x157   : > { %v2938_v25 = vpop.eup %2937 }
 0x158   : > { %v897_v26 = vadd.f32 %v2627_v23, %v889_v24  ;;  %v882_v27 = vmul.f32 %v2938_v25, %v866_v10 }
 0x15a   : > { %899 = vst.msk [vmem:[#allocation2] sm:$0xff] %vm855_vm0, %v897_v26  ;;  %v890_v28 = vmul.f32 %v2626_v21, %v882_v27 }
 0x15c   : > { %v898_v29 = vadd.f32 %v2627_v23, %v890_v28 }
 0x15e   : > { %900 = vst.msk [vmem:[#allocation2 + $0x8] sm:$0xff] %vm855_vm0, %v898_v29 }
 0x15f PF: > { %v2954_v30 = vld [vmem:[%s3228_s0 + $0x8] sm:$0xff]   ;;  %v3070_v31 = vmov 0.0   ;;  %v2955_v32 = vld [vmem:[%s3228_s0] sm:$0xff]   ;;  %vm3071_vm1 = vmmov 0   ;;  %vm929_vm2 = vcmask 261120   ;;  %s3642_s21 = scalar_lea.vmem %s3601_s5, %s3218_s25  ;;  %s3072_s16 = smov 96  }
 0x160   : > { %2737 = vmatprep.subr.bf16.mxu0 %v3070_v31  ;;  %2745 = vmatprep.subr.bf16.mxu1 %v3070_v31  ;;  %v2628_v36 = vld [vmem:[%s3642_s21] ss:$0 sm:$0xff]  ;;  %vm991_vm3 = vcmask 64512   ;;  %s3643_s17 = sld [smem:[#allocation10_spill]]  ;;  %s3073_s3 = smov 64   ;;  %vm1116_vm4 = vcmask 1043456  }
 0x161   : > { %2738 = vmatpush3.bf16.msra.mxu0 %v2954_v30  ;;  %2741 = vmatprep.mubr.msk.bf16.mxu0 %vm3071_vm1, %v3070_v31  ;;  %v3299_v33 = vld [vmem:[#allocation2] sm:$0xff]  ;;  %s3074_s29 = smov 88   ;;  %s3075_s0 = smov 120   ;;  %vm1894_vm5 = vcmask 130048   ;;  %vm1897_vm6 = vcmask 195584   ;;  %vm2175_vm9 = vcmask 523264  }
 0x162   : > { %2739 = vmatprep.subr.bf16.mxu0 %v3070_v31  ;;  %2747 = vmatprep.mubr.msk.bf16.mxu1 %vm3071_vm1, %v3070_v31  ;;  %s3076_s24 = smov 56   ;;  %s3077_s21 = smov 80  }
 0x163   : > { %s3079_s22 = smov 48   ;;  %s3080_s28 = smov 72  }
 0x164   : > { %s3081_s19 = smov 104   ;;  %s3082_s27 = smov 40  }
 0x165   : > { %v3301_v34 = vld [vmem:[#allocation2 + $0x8] sm:$0xff]  ;;  %2740 = vmatpush3.bf16.msra.mxu0 %v2955_v32  ;;  %p2668_p6 = scmp.ne.s32.totalorder %s3060_s1, 1 }
 0x166   : > { %v905_v35 = vpack.c.bf16 %v3301_v34, %v3299_v33  ;;  %2751 = vmatprep.subr.bf16.mxu0 %v3070_v31  ;;  %v3338_v49 = vld [vmem:[%s3643_s17] ss:$0 sm:$0xff]  ;;  %v3344_v53 = vld [vmem:[%s3643_s17 + $0x1] ss:$0 sm:$0xff] }
 0x168   : > { %2742 = vmatmul.mubr.msk.bf16.vlgmr.msra.gmra.mxu0 %vm929_vm2, %v905_v35 }
 0x169   : > { %2753 = vmatprep.mubr.msk.bf16.mxu0 %vm3071_vm1, %v3070_v31 }
 0x228   : > { %v967_v37 = vpop.f32.mrf.mxu0 }
 0x229   : > { %v968_v38 = vadd.f32 %v2628_v36, %v967_v37 }
 0x22a   : > { %v2743_v39 = vpop.f32.mrf.mxu0 }
 0x22b   : > { %v3317_v40 = vpack.c.bf16 %v968_v38, %v968_v38 }
 0x22c   : > { %v970_v41 = vpop.f32.mrf.mxu0 }
 0x22d   : > { %v971_v42 = vadd.f32 %v2628_v36, %v970_v41  ;;  %989 = vrot.lane.b32.xlu0 %v3317_v40, %s3072_s16 }
 0x22e   : > { %v2744_v43 = vpop.f32.mrf.mxu0 }
 0x22f   : > { %v3320_v44 = vpack.c.bf16 %v971_v42, %v971_v42 }
 0x231   : > { %1039 = vrot.lane.b32.xlu0 %v3320_v44, %s3072_s16  ;;  %s3078_s16 = smov 112  }
 0x29f   : > { %v990_v45 = vpop.permute.xlu0 %989 }
 0x2a0   : > { %v996_v46 = vsel %vm991_vm3, %v990_v45, 0 }
 0x2a1   : > { %2746 = vmatpush3.bf16.xpose.msra.mxu1 %v996_v46 }
 0x2a2   : > { %2757 = vmatprep.subr.bf16.mxu1 %v3070_v31 }
 0x2a3   : > { %v1040_v47 = vpop.permute.xlu0 %1039 }
 0x2a4   : > { %v1045_v48 = vsel %vm991_vm3, %v1040_v47, 0 }
 0x2a5   : > { %2752 = vmatpush3.bf16.xpose.msra.mxu0 %v1045_v48 }
 0x2a6   : > { %2763 = vmatprep.subr.bf16.mxu0 %v3070_v31 }
 0x2a8   : > { %2748 = vmatmul.mubr.msk.bf16.vlgmr.msra.gmra.mxu1 %vm991_vm3, %v3317_v40 }
 0x2a9   : > { %2759 = vmatprep.mubr.msk.bf16.mxu1 %vm3071_vm1, %v3070_v31 }
 0x2ac   : > { %2754 = vmatmul.mubr.msk.bf16.vlgmr.msra.gmra.mxu0 %vm991_vm3, %v3320_v44 }
 0x2ad   : > { %2765 = vmatprep.mubr.msk.bf16.mxu0 %vm3071_vm1, %v3070_v31 }
 0x368   : > { %v1032_v50 = vpop.f32.mrf.mxu1 }
 0x369   : > { %v1033_v51 = vadd.f32 %v3338_v49, %v1032_v50 }
 0x36a   : > { %v2749_v52 = vpop.f32.mrf.mxu1 }
 0x36b   : > { %v1087_v54 = vsel %vm991_vm3, %v1033_v51, -inf }
 0x36c   : > { %1088 = vmax.xlane.f32.xlu1 %v1087_v54  ;;  %v1035_v55 = vpop.f32.mrf.mxu1  ;;  %v1081_v56 = vpop.f32.mrf.mxu0 }
 0x36d   : > { %v1082_v57 = vadd.f32 %v3344_v53, %v1081_v56 }
 0x36e   : > { %v2750_v58 = vpop.f32.mrf.mxu1  ;;  %v2755_v59 = vpop.f32.mrf.mxu0 }
 0x36f   : > { %v1090_v60 = vsel %vm991_vm3, %v1082_v57, -inf }
 0x370   : > { %1091 = vmax.xlane.f32.xlu1 %v1090_v60  ;;  %v1084_v61 = vpop.f32.mrf.mxu0 }
 0x372   : > { %v2756_v62 = vpop.f32.mrf.mxu0 }
 0x381   : > { %1111 = vrot.lane.b32.xlu1 %v3317_v40, %s3073_s3 }
 0x385   : > { %1160 = vrot.lane.b32.xlu1 %v3320_v44, %s3073_s3  ;;  %s3083_s3 = smov 8  }
 0x389   : > { %1210 = vrot.lane.b32.xlu1 %v3317_v40, %s3074_s29 }
 0x3f5   : > { %v1089_v63 = vpop.xlane.xlu1 %1088 }
 0x3f6   : > { %v1093_v0 = vsub.f32 %v1033_v51, %v1089_v63 }
 0x3f8   : > { %v1095_v1 = vmul.f32 1.442695, %v1093_v0 }
 0x3f9   : > { %v1092_v2 = vpop.xlane.xlu1 %1091 }
 0x3fa   : > { %2964 = vpow2.f32 %v1095_v1  ;;  %v1094_v3 = vsub.f32 %v1082_v57, %v1092_v2 }
 0x3fc   : > { %v1097_v4 = vmul.f32 1.442695, %v1094_v3 }
 0x3fd   : > { %v1112_v5 = vpop.permute.xlu1 %1111 }
 0x3fe   : > { %2966 = vpow2.f32 %v1097_v4  ;;  %v1118_v6 = vsel %vm1116_vm4, %v1112_v5, 0 }
 0x3ff   : > { %2758 = vmatpush3.bf16.msra.mxu1 %v1118_v6 }
 0x400   : > { %2769 = vmatprep.subr.bf16.mxu1 %v3070_v31 }
 0x401   : > { %v1161_v7 = vpop.permute.xlu1 %1160 }
 0x402   : > { %v1166_v8 = vsel %vm1116_vm4, %v1161_v7, 0 }
 0x403   : > { %2764 = vmatpush3.bf16.msra.mxu0 %v1166_v8 }
 0x404   : > { %2775 = vmatprep.subr.bf16.mxu0 %v3070_v31 }
 0x405   : > { %v1211_v13 = vpop.permute.xlu1 %1210 }
 0x406   : > { %v1216_v20 = vsel %vm991_vm3, %v1211_v13, 0 }
 0x407   : > { %v2965_v9 = vpop.eup %2964 }
 0x408   : > { %v1099_v10 = vsel %vm991_vm3, %v2965_v9, 0.0 }
 0x409   : > { %1100 = vadd.xlane.f32.xlu0 %v1099_v10 }
 0x40b   : > { %v2967_v11 = vpop.eup %2966 }
 0x40c   : > { %v1102_v12 = vsel %vm991_vm3, %v2967_v11, 0.0 }
 0x40d   : > { %1103 = vadd.xlane.f32.xlu1 %v1102_v12 }
 0x41e   : > { %1260 = vrot.lane.b32.xlu1 %v3320_v44, %s3074_s29  ;;  %s3084_s29 = smov 16  }
 0x41f   : > { %1208 = vrot.lane.b32.xlu0 %v3317_v40, %s3075_s0 }
 0x422   : > { %1258 = vrot.lane.b32.xlu1 %v3320_v44, %s3075_s0  ;;  %s3085_s0 = smov 24  }
 0x492   : > { %v1101_v14 = vpop.xlane.xlu0 %1100 }
 0x493   : > { %2968 = vrcp.f32 %v1101_v14 }
 0x496   : > { %v1104_v15 = vpop.xlane.xlu1 %1103  ;;  %v1209_v25 = vpop.permute.xlu0 %1208 }
 0x497   : > { %2970 = vrcp.f32 %v1104_v15 }
 0x49a   : > { %v1261_v22 = vpop.permute.xlu1 %1260 }
 0x49b   : > { %v1266_v24 = vsel %vm991_vm3, %v1261_v22, 0 }
 0x49e   : > { %v1259_v26 = vpop.permute.xlu1 %1258 }
 0x4a0   : > { %v2969_v16 = vpop.eup %2968 }
 0x4a1   : > { %v1107_v17 = vmul.f32 %v2969_v16, %v2965_v9 }
 0x4a3   : > { %v1109_v18 = vpack.c.bf16 %v1107_v17, %v1107_v17 }
 0x4a4   : > { %v2971_v19 = vpop.eup %2970 }
 0x4a5   : > { %2760 = vmatmul.mubr.msk.bf16.vlgmr.msra.gmra.mxu1 %vm991_vm3, %v1109_v18  ;;  %v1108_v21 = vmul.f32 %v2971_v19, %v2967_v11 }
 0x4a6   : > { %2770 = vmatpush3.bf16.xpose.msra.mxu1 %v1216_v20  ;;  %2771 = vmatprep.mubr.msk.bf16.mxu1 %vm3071_vm1, %v3070_v31 }
 0x4a7   : > { %v1110_v23 = vpack.c.bf16 %v1108_v21, %v1108_v21  ;;  %2781 = vmatprep.subr.bf16.mxu1 %v3070_v31 }
 0x4a9   : > { %2766 = vmatmul.mubr.msk.bf16.vlgmr.msra.gmra.mxu0 %vm991_vm3, %v1110_v23 }
 0x4aa   : > { %2776 = vmatpush3.bf16.xpose.msra.mxu0 %v1266_v24  ;;  %2777 = vmatprep.mubr.msk.bf16.mxu0 %vm3071_vm1, %v3070_v31 }
 0x4ab   : > { %2787 = vmatprep.subr.bf16.mxu0 %v3070_v31 }
 0x4ad   : > { %2772 = vmatmul.mubr.msk.bf16.vlgmr.msra.gmra.mxu1 %vm991_vm3, %v1209_v25 }
 0x4ae   : > { %2783 = vmatprep.mubr.msk.bf16.mxu1 %vm3071_vm1, %v3070_v31 }
 0x4b1   : > { %2778 = vmatmul.mubr.msk.bf16.vlgmr.msra.gmra.mxu0 %vm991_vm3, %v1259_v26 }
 0x4b2   : > { %2789 = vmatprep.mubr.msk.bf16.mxu0 %vm3071_vm1, %v3070_v31 }
 0x565   : > { %v3377_v27 = vpop.f32.mrf.mxu1 }
 0x567   : > { %v2761_v28 = vpop.f32.mrf.mxu1 }
 0x569   : > { %v1157_v29 = vpop.f32.mrf.mxu1  ;;  %v3379_v30 = vpop.f32.mrf.mxu0 }
 0x56b   : > { %v2762_v32 = vpop.f32.mrf.mxu1  ;;  %v2767_v35 = vpop.f32.mrf.mxu0 }
 0x56d   : > { %v1205_v36 = vpop.f32.mrf.mxu0  ;;  %v1252_v37 = vpop.f32.mrf.mxu1 }
 0x56e   : > { %v1253_v38 = vadd.f32 %v3338_v49, %v1252_v37 }
 0x56f   : > { %v2768_v39 = vpop.f32.mrf.mxu0  ;;  %v2773_v41 = vpop.f32.mrf.mxu1 }
 0x570   : > { %v1308_v42 = vsel %vm991_vm3, %v1253_v38, -inf }
 0x571   : > { %1309 = vmax.xlane.f32.xlu1 %v1308_v42  ;;  %v1255_v43 = vpop.f32.mrf.mxu1  ;;  %v1302_v45 = vpop.f32.mrf.mxu0 }
 0x572   : > { %v1303_v46 = vadd.f32 %v3344_v53, %v1302_v45 }
 0x573   : > { %v2774_v47 = vpop.f32.mrf.mxu1  ;;  %v2779_v48 = vpop.f32.mrf.mxu0 }
 0x574   : > { %v1311_v50 = vsel %vm991_vm3, %v1303_v46, -inf }
 0x575   : > { %1312 = vmax.xlane.f32.xlu0 %v1311_v50  ;;  %v1305_v51 = vpop.f32.mrf.mxu0 }
 0x577   : > { %v2780_v52 = vpop.f32.mrf.mxu0 }
 0x582   : > { %1332 = vrot.lane.b32.xlu1 %v3317_v40, %s3076_s24 }
 0x586   : > { %1430 = vrot.lane.b32.xlu1 %v3317_v40, %s3077_s21 }
 0x58b   : > { %1380 = vrot.lane.b32.xlu0 %v3320_v44, %s3076_s24 }
 0x58f   : > { %1428 = vrot.lane.b32.xlu0 %v3317_v40, %s3078_s16 }
 0x5fa   : > { %v1310_v54 = vpop.xlane.xlu1 %1309 }
 0x5fb   : > { %v1314_v55 = vsub.f32 %v1253_v38, %v1310_v54 }
 0x5fd   : > { %v1316_v56 = vmul.f32 1.442695, %v1314_v55 }
 0x5fe   : > { %v1333_v57 = vpop.permute.xlu1 %1332  ;;  %v1313_v58 = vpop.xlane.xlu0 %1312 }
 0x5ff   : > { %2972 = vpow2.f32 %v1316_v56  ;;  %v1338_v59 = vsel %vm1116_vm4, %v1333_v57, 0  ;;  %v1315_v60 = vsub.f32 %v1303_v46, %v1313_v58 }
 0x600   : > { %2782 = vmatpush3.bf16.msra.mxu1 %v1338_v59 }
 0x601   : > { %v1318_v61 = vmul.f32 1.442695, %v1315_v60  ;;  %2793 = vmatprep.subr.bf16.mxu1 %v3070_v31 }
 0x602   : > { %v1381_v62 = vpop.permute.xlu0 %1380  ;;  %v1431_v4 = vpop.permute.xlu1 %1430 }
 0x603   : > { %2974 = vpow2.f32 %v1318_v61  ;;  %v1386_v63 = vsel %vm1116_vm4, %v1381_v62, 0  ;;  %v1436_v11 = vsel %vm991_vm3, %v1431_v4, 0 }
 0x604   : > { %2788 = vmatpush3.bf16.msra.mxu0 %v1386_v63 }
 0x605   : > { %2799 = vmatprep.subr.bf16.mxu0 %v3070_v31 }
 0x606   : > { %v1429_v16 = vpop.permute.xlu0 %1428 }
 0x60c   : > { %v2973_v0 = vpop.eup %2972 }
 0x60d   : > { %v1320_v1 = vsel %vm991_vm3, %v2973_v0, 0.0 }
 0x60e   : > { %1321 = vadd.xlane.f32.xlu1 %v1320_v1 }
 0x610   : > { %v2975_v2 = vpop.eup %2974 }
 0x611   : > { %v1323_v3 = vsel %vm991_vm3, %v2975_v2, 0.0 }
 0x612   : > { %1324 = vadd.xlane.f32.xlu1 %v1323_v3 }
 0x623   : > { %1480 = vrot.lane.b32.xlu1 %v3320_v44, %s3077_s21  ;;  %s3644_s21 = scalar_lea.vmem %s3603_s7, %s3218_s25 }
 0x627   : > { %1478 = vrot.lane.b32.xlu1 %v3320_v44, %s3078_s16  ;;  %s3647_s16 = sld [smem:[#allocation15_spill]] (!%p2668_p6) }
 0x697   : > { %v1322_v5 = vpop.xlane.xlu1 %1321 }
 0x698   : > { %2976 = vrcp.f32 %v1322_v5 }
 0x69b   : > { %v1325_v6 = vpop.xlane.xlu1 %1324 }
 0x69c   : > { %2978 = vrcp.f32 %v1325_v6 }
 0x69f   : > { %v1481_v13 = vpop.permute.xlu1 %1480 }
 0x6a0   : > { %v1486_v15 = vsel %vm991_vm3, %v1481_v13, 0 }
 0x6a3   : > { %v1479_v17 = vpop.permute.xlu1 %1478 }
 0x6a5   : > { %v2977_v7 = vpop.eup %2976 }
 0x6a6   : > { %v1328_v8 = vmul.f32 %v2977_v7, %v2973_v0 }
 0x6a8   : > { %v1330_v9 = vpack.c.bf16 %v1328_v8, %v1328_v8 }
 0x6a9   : > { %v2979_v10 = vpop.eup %2978 }
 0x6aa   : > { %2784 = vmatmul.mubr.msk.bf16.vlgmr.msra.gmra.mxu1 %vm991_vm3, %v1330_v9  ;;  %v1329_v12 = vmul.f32 %v2979_v10, %v2975_v2 }
 0x6ab   : > { %2794 = vmatpush3.bf16.xpose.msra.mxu1 %v1436_v11  ;;  %2795 = vmatprep.mubr.msk.bf16.mxu1 %vm3071_vm1, %v3070_v31 }
 0x6ac   : > { %v1331_v14 = vpack.c.bf16 %v1329_v12, %v1329_v12  ;;  %2805 = vmatprep.subr.bf16.mxu1 %v3070_v31 }
 0x6ae   : > { %2790 = vmatmul.mubr.msk.bf16.vlgmr.msra.gmra.mxu0 %vm991_vm3, %v1331_v14 }
 0x6af   : > { %2800 = vmatpush3.bf16.xpose.msra.mxu0 %v1486_v15  ;;  %2801 = vmatprep.mubr.msk.bf16.mxu0 %vm3071_vm1, %v3070_v31 }
 0x6b0   : > { %2811 = vmatprep.subr.bf16.mxu0 %v3070_v31 }
 0x6b2   : > { %2796 = vmatmul.mubr.msk.bf16.vlgmr.msra.gmra.mxu1 %vm991_vm3, %v1429_v16 }
 0x6b3   : > { %2807 = vmatprep.mubr.msk.bf16.mxu1 %vm3071_vm1, %v3070_v31 }
 0x6b6   : > { %2802 = vmatmul.mubr.msk.bf16.vlgmr.msra.gmra.mxu0 %vm991_vm3, %v1479_v17 }
 0x6b7   : > { %2813 = vmatprep.mubr.msk.bf16.mxu0 %vm3071_vm1, %v3070_v31 }
 0x76a   : > { %v3413_v18 = vpop.f32.mrf.mxu1 }
 0x76c   : > { %v2785_v19 = vpop.f32.mrf.mxu1 }
 0x76e   : > { %v1377_v20 = vpop.f32.mrf.mxu1  ;;  %v3415_v21 = vpop.f32.mrf.mxu0 }
 0x76f   : > { %v2939_v22 = vpack.i.bf16 %v3415_v21, %v3413_v18 }
 0x770   : > { %v2786_v23 = vpop.f32.mrf.mxu1  ;;  %v2791_v24 = vpop.f32.mrf.mxu0 }
 0x772   : > { %v1425_v25 = vpop.f32.mrf.mxu0  ;;  %v1472_v26 = vpop.f32.mrf.mxu1 }
 0x773   : > { %v1473_v28 = vadd.f32 %v3338_v49, %v1472_v26 }
 0x774   : > { %v2792_v29 = vpop.f32.mrf.mxu0  ;;  %v2797_v32 = vpop.f32.mrf.mxu1 }
 0x775   : > { %v1528_v35 = vsel %vm991_vm3, %v1473_v28, -inf }
 0x776   : > { %1529 = vmax.xlane.f32.xlu0 %v1528_v35  ;;  %v1475_v36 = vpop.f32.mrf.mxu1  ;;  %v1522_v37 = vpop.f32.mrf.mxu0 }
 0x777   : > { %v1523_v38 = vadd.f32 %v3344_v53, %v1522_v37 }
 0x778   : > { %v2798_v39 = vpop.f32.mrf.mxu1  ;;  %v2803_v41 = vpop.f32.mrf.mxu0 }
 0x779   : > { %v1531_v42 = vsel %vm991_vm3, %v1523_v38, -inf }
 0x77a   : > { %1532 = vmax.xlane.f32.xlu1 %v1531_v42  ;;  %v1525_v43 = vpop.f32.mrf.mxu0 }
 0x77c   : > { %v2804_v45 = vpop.f32.mrf.mxu0 }
 0x78b   : > { %1552 = vrot.lane.b32.xlu1 %v3317_v40, %s3079_s22 }
 0x78f   : > { %1650 = vrot.lane.b32.xlu1 %v3317_v40, %s3080_s28 }
 0x793   : > { %1700 = vrot.lane.b32.xlu1 %v3320_v44, %s3080_s28 }
 0x797   : > { %1698 = vrot.lane.b32.xlu1 %v3320_v44, %s3081_s19 }
 0x7ff   : > { %v1530_v46 = vpop.xlane.xlu0 %1529 }
 0x800   : > { %v1534_v47 = vsub.f32 %v1473_v28, %v1530_v46 }
 0x802   : > { %v1536_v48 = vmul.f32 1.442695, %v1534_v47 }
 0x803   : > { %v1533_v50 = vpop.xlane.xlu1 %1532 }
 0x804   : > { %2980 = vpow2.f32 %v1536_v48  ;;  %v1535_v51 = vsub.f32 %v1523_v38, %v1533_v50 }
 0x806   : > { %v1538_v52 = vmul.f32 1.442695, %v1535_v51 }
 0x807   : > { %v1553_v54 = vpop.permute.xlu1 %1552 }
 0x808   : > { %2982 = vpow2.f32 %v1538_v52  ;;  %v1558_v55 = vsel %vm1116_vm4, %v1553_v54, 0 }
 0x809   : > { %2806 = vmatpush3.bf16.msra.mxu1 %v1558_v55 }
 0x80a   : > { %2817 = vmatprep.subr.bf16.mxu1 %v3070_v31 }
 0x80b   : > { %v1651_v1 = vpop.permute.xlu1 %1650 }
 0x80c   : > { %v1656_v5 = vsel %vm991_vm3, %v1651_v1, 0 }
 0x80f   : > { %v1701_v7 = vpop.permute.xlu1 %1700 }
 0x810   : > { %v1706_v9 = vsel %vm991_vm3, %v1701_v7, 0 }
 0x811   : > { %v2981_v56 = vpop.eup %2980 }
 0x812   : > { %v1540_v57 = vsel %vm991_vm3, %v2981_v56, 0.0 }
 0x813   : > { %1541 = vadd.xlane.f32.xlu0 %v1540_v57  ;;  %v1699_v11 = vpop.permute.xlu1 %1698 }
 0x815   : > { %v2983_v58 = vpop.eup %2982 }
 0x816   : > { %v1543_v59 = vsel %vm991_vm3, %v2983_v58, 0.0 }
 0x817   : > { %1544 = vadd.xlane.f32.xlu0 %v1543_v59 }
 0x82d   : > { %1600 = vrot.lane.b32.xlu0 %v3320_v44, %s3079_s22 }
 0x831   : > { %1648 = vrot.lane.b32.xlu0 %v3317_v40, %s3081_s19 }
 0x89c   : > { %v1542_v60 = vpop.xlane.xlu0 %1541 }
 0x89d   : > { %2984 = vrcp.f32 %v1542_v60  ;;  %v2956_v60 = vld [vmem:[%s3233_s2 + $0x8] sm:$0xff]  }
 0x8a0   : > { %v1545_v61 = vpop.xlane.xlu0 %1544 }
 0x8a1   : > { %2986 = vrcp.f32 %v1545_v61  ;;  %v2957_v61 = vld [vmem:[%s3233_s2] sm:$0xff]  }
 0x8a4   : > { %v1601_v62 = vpop.permute.xlu0 %1600 }
 0x8a5   : > { %v1606_v63 = vsel %vm1116_vm4, %v1601_v62, 0 }
 0x8a6   : > { %2812 = vmatpush3.bf16.msra.mxu0 %v1606_v63 }
 0x8a7   : > { %2823 = vmatprep.subr.bf16.mxu0 %v3070_v31 }
 0x8a8   : > { %v1649_v10 = vpop.permute.xlu0 %1648 }
 0x8aa   : > { %v2985_v0 = vpop.eup %2984 }
 0x8ab   : > { %v1548_v2 = vmul.f32 %v2985_v0, %v2981_v56 }
 0x8ad   : > { %v1550_v3 = vpack.c.bf16 %v1548_v2, %v1548_v2 }
 0x8ae   : > { %v2987_v4 = vpop.eup %2986 }
 0x8af   : > { %2808 = vmatmul.mubr.msk.bf16.vlgmr.msra.gmra.mxu1 %vm991_vm3, %v1550_v3  ;;  %v1549_v6 = vmul.f32 %v2987_v4, %v2983_v58 }
 0x8b0   : > { %2818 = vmatpush3.bf16.xpose.msra.mxu1 %v1656_v5  ;;  %2819 = vmatprep.mubr.msk.bf16.mxu1 %vm3071_vm1, %v3070_v31 }
 0x8b1   : > { %v1551_v8 = vpack.c.bf16 %v1549_v6, %v1549_v6  ;;  %2829 = vmatprep.subr.bf16.mxu1 %v3070_v31 }
 0x8b3   : > { %2814 = vmatmul.mubr.msk.bf16.vlgmr.msra.gmra.mxu0 %vm991_vm3, %v1551_v8 }
 0x8b4   : > { %2824 = vmatpush3.bf16.xpose.msra.mxu0 %v1706_v9  ;;  %2825 = vmatprep.mubr.msk.bf16.mxu0 %vm3071_vm1, %v3070_v31 }
 0x8b5   : > { %2835 = vmatprep.subr.bf16.mxu0 %v3070_v31 }
 0x8b7   : > { %2820 = vmatmul.mubr.msk.bf16.vlgmr.msra.gmra.mxu1 %vm991_vm3, %v1649_v10 }
 0x8b8   : > { %2831 = vmatprep.mubr.msk.bf16.mxu1 %vm3071_vm1, %v3070_v31 }
 0x8bb   : > { %2826 = vmatmul.mubr.msk.bf16.vlgmr.msra.gmra.mxu0 %vm991_vm3, %v1699_v11 }
 0x8bc   : > { %2837 = vmatprep.mubr.msk.bf16.mxu0 %vm3071_vm1, %v3070_v31 }
 0x96f   : > { %v1594_v12 = vpop.f32.mrf.mxu1 }
 0x971   : > { %v2809_v13 = vpop.f32.mrf.mxu1 }
 0x973   : > { %v1597_v14 = vpop.f32.mrf.mxu1  ;;  %v1642_v15 = vpop.f32.mrf.mxu0 }
 0x975   : > { %v2810_v16 = vpop.f32.mrf.mxu1  ;;  %v2815_v17 = vpop.f32.mrf.mxu0 }
 0x977   : > { %v1645_v19 = vpop.f32.mrf.mxu0  ;;  %v1692_v20 = vpop.f32.mrf.mxu1 }
 0x978   : > { %v1693_v23 = vadd.f32 %v3338_v49, %v1692_v20  ;;  %v2944_v49 = vpack.i.bf16 %v1642_v15, %v1594_v12 }
 0x979   : > { %v2816_v24 = vpop.f32.mrf.mxu0  ;;  %v2821_v25 = vpop.f32.mrf.mxu1 }
 0x97a   : > { %v1748_v26 = vsel %vm991_vm3, %v1693_v23, -inf }
 0x97b   : > { %1749 = vmax.xlane.f32.xlu0 %v1748_v26  ;;  %v1695_v28 = vpop.f32.mrf.mxu1  ;;  %v1742_v29 = vpop.f32.mrf.mxu0 }
 0x97c   : > { %v1743_v32 = vadd.f32 %v3344_v53, %v1742_v29 }
 0x97d   : > { %v2822_v35 = vpop.f32.mrf.mxu1  ;;  %v2827_v36 = vpop.f32.mrf.mxu0 }
 0x97e   : > { %v1751_v37 = vsel %vm991_vm3, %v1743_v32, -inf }
 0x97f   : > { %1752 = vmax.xlane.f32.xlu1 %v1751_v37  ;;  %v1745_v38 = vpop.f32.mrf.mxu0 }
 0x981   : > { %v2828_v39 = vpop.f32.mrf.mxu0 }
 0x990   : > { %1772 = vrot.lane.b32.xlu1 %v3317_v40, %s3082_s27 }
 0x994   : > { %2940 = vrot.lane.b32.xlu1 %v2939_v22, %s3083_s3 }
 0x998   : > { %2945 = vrot.lane.b32.xlu1 %v2944_v49, %s3084_s29  ;;  %s3649_s29 = sld [smem:[#allocation16_spill]] (!%p2668_p6) }
 0xa04   : > { %v1750_v41 = vpop.xlane.xlu0 %1749 }
 0xa05   : > { %v1754_v53 = vsub.f32 %v1693_v23, %v1750_v41 }
 0xa07   : > { %v1756_v42 = vmul.f32 1.442695, %v1754_v53 }
 0xa08   : > { %v1753_v43 = vpop.xlane.xlu1 %1752 }
 0xa09   : > { %2988 = vpow2.f32 %v1756_v42  ;;  %v1755_v45 = vsub.f32 %v1743_v32, %v1753_v43 }
 0xa0b   : > { %v1758_v46 = vmul.f32 1.442695, %v1755_v45 }
 0xa0c   : > { %v1773_v47 = vpop.permute.xlu1 %1772 }
 0xa0d   : > { %2990 = vpow2.f32 %v1758_v46  ;;  %v1778_v48 = vsel %vm1116_vm4, %v1773_v47, 0 }
 0xa0e   : > { %2830 = vmatpush3.bf16.msra.mxu1 %v1778_v48 }
 0xa0f   : > { %2841 = vmatprep.subr.bf16.mxu1 %v3070_v31 }
 0xa10   : > { %v2941_v7 = vpop.permute.xlu1 %2940 }
 0xa11   : > { %v2943_v9 = vunpack.i.h.bf16 %v2941_v7  ;;  %v2942_v10 = vunpack.i.l.bf16 %v2941_v7 }
 0xa13   : > { %v1893_v14 = vsel %vm991_vm3, %v3379_v30, %v2943_v9  ;;  %v1892_v15 = vsel %vm991_vm3, %v3377_v27, %v2942_v10  ;;  %v2650_v30 = vld [vmem:[%s3644_s21] ss:$0 sm:$0xff] }
 0xa14   : > { %v2946_v8 = vpop.permute.xlu1 %2945 }
 0xa15   : > { %v2948_v11 = vunpack.i.h.bf16 %v2946_v8  ;;  %v2947_v12 = vunpack.i.l.bf16 %v2946_v8 }
 0xa16   : > { %v2989_v40 = vpop.eup %2988 }
 0xa17   : > { %v1760_v18 = vsel %vm991_vm3, %v2989_v40, 0.0  ;;  %v1895_v19 = vsel %vm1894_vm5, %v1892_v15, %v2947_v12  ;;  %v1896_v20 = vsel %vm1894_vm5, %v1893_v14, %v2948_v11 }
 0xa18   : > { %1761 = vadd.xlane.f32.xlu0 %v1760_v18 }
 0xa1a   : > { %v2991_v21 = vpop.eup %2990 }
 0xa1b   : > { %v1763_v22 = vsel %vm991_vm3, %v2991_v21, 0.0 }
 0xa1c   : > { %1764 = vadd.xlane.f32.xlu0 %v1763_v22 }
 0xa32   : > { %1820 = vrot.lane.b32.xlu0 %v3320_v44, %s3082_s27  ;;  %s3646_s27 = scalar_lea.vmem %s3605_s9, %s3218_s25 }
 0xaa1   : > { %v1762_v50 = vpop.xlane.xlu0 %1761 }
 0xaa2   : > { %2992 = vrcp.f32 %v1762_v50 }
 0xaa5   : > { %v1765_v51 = vpop.xlane.xlu0 %1764 }
 0xaa6   : > { %2994 = vrcp.f32 %v1765_v51 }
 0xaa9   : > { %v1821_v52 = vpop.permute.xlu0 %1820 }
 0xaaa   : > { %v1826_v54 = vsel %vm1116_vm4, %v1821_v52, 0 }
 0xaab   : > { %2836 = vmatpush3.bf16.msra.mxu0 %v1826_v54 }
 0xaac   : > { %2849 = vmatprep.subr.bf16.mxu0 %v3070_v31 }
 0xaaf   : > { %v2993_v55 = vpop.eup %2992 }
 0xab0   : > { %v1768_v56 = vmul.f32 %v2993_v55, %v2989_v40  ;;  %v2959_v40 = vld [vmem:[%s3250_s30] sm:$0xff]  }
 0xab2   : > { %v1770_v57 = vpack.c.bf16 %v1768_v56, %v1768_v56 }
 0xab3   : > { %v2995_v58 = vpop.eup %2994 }
 0xab4   : > { %2832 = vmatmul.mubr.msk.bf16.vlgmr.msra.gmra.mxu1 %vm991_vm3, %v1770_v57  ;;  %v1769_v59 = vmul.f32 %v2995_v58, %v2991_v21 }
 0xab5   : > { %2845 = vmatprep.mubr.msk.bf16.mxu1 %vm3071_vm1, %v3070_v31  ;;  %2842 = vmatpush3.bf16.msra.mxu1 %v2956_v60 }
 0xab6   : > { %v1771_v44 = vpack.c.bf16 %v1769_v59, %v1769_v59  ;;  %2843 = vmatprep.subr.bf16.mxu1 %v3070_v31 }
 0xab8   : > { %2838 = vmatmul.mubr.msk.bf16.vlgmr.msra.gmra.mxu0 %vm991_vm3, %v1771_v44  ;;  %v2655_v44 = vld [vmem:[%s3646_s27] ss:$0 sm:$0xff] }
 0xab9   : > { %2853 = vmatprep.mubr.msk.bf16.mxu0 %vm3071_vm1, %v3070_v31  ;;  %2844 = vmatpush3.bf16.msra.mxu1 %v2957_v61 }
 0xaba   : > { %2857 = vmatprep.subr.bf16.mxu1 %v3070_v31 }
 0xb74   : > { %v1814_v62 = vpop.f32.mrf.mxu1 }
 0xb76   : > { %v2833_v63 = vpop.f32.mrf.mxu1 }
 0xb78   : > { %v1817_v0 = vpop.f32.mrf.mxu1  ;;  %v1862_v1 = vpop.f32.mrf.mxu0 }
 0xb79   : > { %v2949_v2 = vpack.i.bf16 %v1862_v1, %v1814_v62  ;;  %v2960_v0 = vld [vmem:[%s3260_s23 + $0x18] sm:$0xff]   ;;  %v2961_v1 = vld [vmem:[%s3260_s23 + $0x10] sm:$0xff]  }
 0xb7a   : > { %v2834_v3 = vpop.f32.mrf.mxu1  ;;  %v2839_v4 = vpop.f32.mrf.mxu0 }
 0xb7b   : > { %2950 = vrot.lane.b32.xlu0 %v2949_v2, %s3085_s0  ;;  %v2962_v2 = vld [vmem:[%s3260_s23 + $0x8] sm:$0xff]   ;;  %v2963_v3 = vld [vmem:[%s3260_s23] sm:$0xff]  }
 0xb7c   : > { %v1865_v5 = vpop.f32.mrf.mxu0  ;;  %v2656_v4 = vld [vmem:[%s831_s6] ss:$0 sm:$0xff] }
 0xb7e   : > { %v2840_v6 = vpop.f32.mrf.mxu0 }
 0xbed   : > { %v2951_v13 = vpop.permute.xlu0 %2950 }
 0xbee   : > { %v2953_v16 = vunpack.i.h.bf16 %v2951_v13  ;;  %v2952_v17 = vunpack.i.l.bf16 %v2951_v13 }
 0xbf0   : > { %v1899_v23 = vsel %vm1897_vm6, %v1896_v20, %v2953_v16  ;;  %v1898_v24 = vsel %vm1897_vm6, %v1895_v19, %v2952_v17 }
 0xbf1   : > { %v1900_v25 = vpack.c.bf16 %v1899_v23, %v1898_v24 }
 0xbf3   : > { %2846 = vmatmul.mubr.msk.bf16.vlgmr.msra.gmra.mxu1 %vm929_vm2, %v1900_v25 }
 0xbf4   : > { %2865 = vmatprep.mubr.msk.bf16.mxu1 %vm3071_vm1, %v3070_v31  ;;  %2858 = vmatpush3.bf16.msra.mxu1 %v2960_v0 }
 0xbf5   : > { %2859 = vmatprep.subr.bf16.mxu1 %v3070_v31 }
 0xbf8   : > { %2860 = vmatpush3.bf16.msra.mxu1 %v2961_v1  ;;  %v2660_v1 = vld [vmem:[%s839_s26] ss:$0 sm:$0xff]  ;;  %s3650_s26 = sld [smem:[#allocation18_spill]] (!%p2668_p6) }
 0xbf9   : > { %2861 = vmatprep.subr.bf16.mxu1 %v3070_v31 }
 0xbfc   : > { %2862 = vmatpush3.bf16.msra.mxu1 %v2962_v2 }
 0xbfd   : > { %2863 = vmatprep.subr.bf16.mxu1 %v3070_v31 }
 0xc00   : > { %2864 = vmatpush3.bf16.msra.mxu1 %v2963_v3 }
 0xcb3   : > { %v1961_v26 = vpop.f32.mrf.mxu1 }
 0xcb4   : > { %v1962_v28 = vadd.f32 %v2650_v30, %v1961_v26 }
 0xcb5   : > { %v2847_v27 = vpop.f32.mrf.mxu1 }
 0xcb6   : > { %v1968_v29 = vadd.f32 %v1962_v28, %v3299_v33 }
 0xcb7   : > { %v1964_v32 = vpop.f32.mrf.mxu1 }
 0xcb8   : > { %v1965_v35 = vadd.f32 %v2650_v30, %v1964_v32  ;;  %v1972_v36 = vsel %vm929_vm2, %v1968_v29, 0.0 }
 0xcb9   : > { %1973 = vadd.xlane.f32.xlu1 %v1972_v36  ;;  %v2848_v37 = vpop.f32.mrf.mxu1 }
 0xcba   : > { %v1969_v38 = vadd.f32 %v1965_v35, %v3301_v34  ;;  %v2958_v34 = vld [vmem:[%s3250_s30 + $0x8] sm:$0xff]   ;;  %s3645_s30 = scalar_lea.vmem %s3604_s8, %s3218_s25 }
 0xcbb   : > { %2850 = vmatpush3.bf16.msra.mxu0 %v2958_v34  ;;  %v2654_v56 = vld [vmem:[%s3645_s30] ss:$0 sm:$0xff]  ;;  %s3648_s30 = sld [smem:[#allocation17_spill]] (!%p2668_p6) }
 0xcbc   : > { %v1975_v39 = vsel %vm929_vm2, %v1969_v38, 0.0  ;;  %2851 = vmatprep.subr.bf16.mxu0 %v3070_v31 }
 0xcbd   : > { %1976 = vadd.xlane.f32.xlu0 %v1975_v39 }
 0xcbf   : > { %2852 = vmatpush3.bf16.msra.mxu0 %v2959_v40 }
 0xd42   : > { %v1974_v49 = vpop.xlane.xlu1 %1973 }
 0xd43   : > { %v1979_v41 = vmul.f32 0.03125, %v1974_v49 }
 0xd45   : > { %v1981_v53 = vsub.f32 %v1968_v29, %v1979_v41 }
 0xd46   : > { %v1977_v42 = vpop.xlane.xlu0 %1976 }
 0xd47   : > { %v1980_v43 = vmul.f32 0.03125, %v1977_v42  ;;  %v1983_v45 = vmul.f32 %v1981_v53, %v1981_v53 }
 0xd49   : > { %v1982_v33 = vsub.f32 %v1969_v38, %v1980_v43  ;;  %v1985_v46 = vsel %vm929_vm2, %v1983_v45, 0.0 }
 0xd4a   : > { %1986 = vadd.xlane.f32.xlu0 %v1985_v46 }
 0xd4b   : > { %v1984_v47 = vmul.f32 %v1982_v33, %v1982_v33 }
 0xd4d   : > { %v1988_v48 = vsel %vm929_vm2, %v1984_v47, 0.0 }
 0xd4e   : > { %1989 = vadd.xlane.f32.xlu1 %v1988_v48 }
 0xdd3   : > { %v1987_v18 = vpop.xlane.xlu0 %1986 }
 0xdd4   : > { %v1991_v21 = vmul.f32 0.03125, %v1987_v18 }
 0xdd6   : > { %v1993_v22 = vadd.f32 1e-12, %v1991_v21 }
 0xdd7   : > { %v1990_v50 = vpop.xlane.xlu1 %1989 }
 0xdd8   : > { %2996 = vrsqrt.f32 %v1993_v22  ;;  %v1992_v51 = vmul.f32 0.03125, %v1990_v50  ;;  %v3086_v22 = vmov -1.0  }
 0xdda   : > { %v1994_v52 = vadd.f32 1e-12, %v1992_v51 }
 0xddc   : > { %2998 = vrsqrt.f32 %v1994_v52 }
 0xde5   : > { %v2997_v54 = vpop.eup %2996 }
 0xde6   : > { %v1997_v55 = vmul.f32 %v2997_v54, %v1981_v53 }
 0xde8   : > { %v2005_v59 = vmul.f32 %v2654_v56, %v1997_v55 }
 0xde9   : > { %v2999_v57 = vpop.eup %2998 }
 0xdea   : > { %v1998_v58 = vmul.f32 %v2999_v57, %v1982_v33  ;;  %v3507_v61 = vadd.f32 %v2655_v44, %v2005_v59 }
 0xdec   : > { %v2006_v60 = vmul.f32 %v2654_v56, %v1998_v58 }
 0xdee   : > { %v3509_v62 = vadd.f32 %v2655_v44, %v2006_v60 }
 0xdf0   : > { %v2015_v63 = vpack.c.bf16 %v3509_v62, %v3507_v61 }
 0xdf2   : > { %2854 = vmatmul.mubr.msk.bf16.vlgmr.msra.gmra.mxu0 %vm929_vm2, %v2015_v63 }
 0xeb2   : > { %v2076_v5 = vpop.f32.mrf.mxu0 }
 0xeb3   : > { %v2077_v6 = vadd.f32 %v2656_v4, %v2076_v5 }
 0xeb4   : > { %v2855_v7 = vpop.f32.mrf.mxu0 }
 0xeb5   : > { %v2085_v8 = vmul.f32 0.70710677, %v2077_v6  ;;  %v2083_v58 = vmul.f32 0.5, %v2077_v6 }
 0xeb6   : > { %v2079_v9 = vpop.f32.mrf.mxu0 }
 0xeb7   : > { %v2091_v10 = vand.u32 2147483647, %v2085_v8  ;;  %v2080_v11 = vadd.f32 %v2656_v4, %v2079_v9  ;;  %vm2087_vm7 = vcmp.ge.f32.partialorder %v2085_v8, 0.0 }
 0xeb8   : > { %v2856_v12 = vpop.f32.mrf.mxu0  ;;  %v2089_v50 = vsel %vm2087_vm7, 1.0, %v3086_v22 }
 0xeb9   : > { %v2093_v13 = vmul.f32 0.3275911, %v2091_v10  ;;  %v2086_v14 = vmul.f32 0.70710677, %v2080_v11  ;;  %v2117_v19 = vsub.f32 0.0, %v2091_v10  ;;  %v2084_v59 = vmul.f32 0.5, %v2080_v11 }
 0xebb   : > { %v2095_v15 = vadd.f32 1.0, %v2093_v13  ;;  %v2092_v16 = vand.u32 2147483647, %v2086_v14  ;;  %v2119_v20 = vmul.f32 %v2117_v19, %v2091_v10  ;;  %vm2088_vm8 = vcmp.ge.f32.partialorder %v2086_v14, 0.0 }
 0xebc   : > { %v2090_v55 = vsel %vm2088_vm8, 1.0, %v3086_v22 }
 0xebd   : > { %3000 = vrcp.f32 %v2095_v15  ;;  %v2094_v31 = vmul.f32 0.3275911, %v2092_v16  ;;  %v2118_v23 = vsub.f32 0.0, %v2092_v16  ;;  %v2121_v30 = vmul.f32 1.442695, %v2119_v20 }
 0xebf   : > { %v2096_v17 = vadd.f32 1.0, %v2094_v31  ;;  %v2120_v26 = vmul.f32 %v2118_v23, %v2092_v16 }
 0xec1   : > { %3002 = vrcp.f32 %v2096_v17  ;;  %v2123_v35 = vmul.f32 1.442695, %v2120_v26 }
 0xec2   : > { %3004 = vpow2.f32 %v2121_v30 }
 0xec3   : > { %3006 = vpow2.f32 %v2123_v35 }
 0xeca   : > { %v3001_v24 = vpop.eup %3000 }
 0xecb   : > { %v2099_v25 = vmul.f32 1.0614054, %v3001_v24 }
 0xecd   : > { %v2101_v28 = vadd.f32 -1.4531521, %v2099_v25 }
 0xece   : > { %v3003_v27 = vpop.eup %3002 }
 0xecf   : > { %v2103_v29 = vmul.f32 %v3001_v24, %v2101_v28  ;;  %v2100_v32 = vmul.f32 1.0614054, %v3003_v27  ;;  %v3005_v47 = vpop.eup %3004 }
 0xed0   : > { %v3007_v21 = vpop.eup %3006 }
 0xed1   : > { %v2105_v36 = vadd.f32 1.4214138, %v2103_v29  ;;  %v2102_v37 = vadd.f32 -1.4531521, %v2100_v32  ;;  %v2667_v32 = vld [vmem:[%s845_s18] ss:$0 sm:$0xff] }
 0xed3   : > { %v2107_v38 = vmul.f32 %v3001_v24, %v2105_v36  ;;  %v2104_v39 = vmul.f32 %v3003_v27, %v2102_v37 }
 0xed5   : > { %v2109_v49 = vadd.f32 -0.28449672, %v2107_v38  ;;  %v2106_v41 = vadd.f32 1.4214138, %v2104_v39 }
 0xed7   : > { %v2111_v53 = vmul.f32 %v3001_v24, %v2109_v49  ;;  %v2108_v42 = vmul.f32 %v3003_v27, %v2106_v41 }
 0xed9   : > { %v2113_v43 = vadd.f32 0.2548296, %v2111_v53  ;;  %v2110_v45 = vadd.f32 -0.28449672, %v2108_v42 }
 0xedb   : > { %v2115_v33 = vmul.f32 %v3001_v24, %v2113_v43  ;;  %v2112_v46 = vmul.f32 %v3003_v27, %v2110_v45 }
 0xedd   : > { %v2125_v48 = vmul.f32 %v3005_v47, %v2115_v33  ;;  %v2114_v34 = vadd.f32 0.2548296, %v2112_v46 }
 0xedf   : > { %v2127_v40 = vsub.f32 1.0, %v2125_v48  ;;  %v2116_v18 = vmul.f32 %v3003_v27, %v2114_v34  ;;  %v2666_v27 = vld [vmem:[%s842_s4] ss:$0 sm:$0xff] }
 0xee1   : > { %v2129_v51 = vmul.f32 %v2127_v40, %v2089_v50  ;;  %v2126_v52 = vmul.f32 %v3007_v21, %v2116_v18 }
 0xee3   : > { %v2128_v54 = vsub.f32 1.0, %v2126_v52  ;;  %v2131_v56 = vadd.f32 1.0, %v2129_v51 }
 0xee5   : > { %v2130_v57 = vmul.f32 %v2128_v54, %v2090_v55  ;;  %v2133_v60 = vmul.f32 %v2131_v56, %v2083_v58 }
 0xee7   : > { %v2132_v44 = vadd.f32 1.0, %v2130_v57 }
 0xee9   : > { %v2134_v63 = vmul.f32 %v2132_v44, %v2084_v59 }
 0xeeb   : > { %v2135_v0 = vpack.c.bf16 %v2134_v63, %v2133_v60 }
 0xeed   : > { %2866 = vmatmul.mubr.msk.bf16.vlgmr.msra.gmra.mxu1 %vm2175_vm9, %v2135_v0 }
 0xfad   : > { %v2213_v2 = vpop.f32.mrf.mxu1 }
 0xfae   : > { %v2214_v3 = vadd.f32 %v2660_v1, %v2213_v2 }
 0xfaf   : > { %v2867_v4 = vpop.f32.mrf.mxu1 }
 0xfb0   : > { %v2220_v5 = vadd.f32 %v2214_v3, %v3507_v61 }
 0xfb1   : > { %v2216_v7 = vpop.f32.mrf.mxu1 }
 0xfb2   : > { %v2217_v8 = vadd.f32 %v2660_v1, %v2216_v7  ;;  %v2224_v6 = vsel %vm929_vm2, %v2220_v5, 0.0 }
 0xfb3   : > { %2225 = vadd.xlane.f32.xlu0 %v2224_v6  ;;  %v2868_v9 = vpop.f32.mrf.mxu1 }
 0xfb4   : > { %v2221_v10 = vadd.f32 %v2217_v8, %v3509_v62 }
 0xfb6   : > { %v2227_v11 = vsel %vm929_vm2, %v2221_v10, 0.0 }
 0xfb7   : > { %2228 = vadd.xlane.f32.xlu1 %v2227_v11 }
0x103c   : > { %v2226_v12 = vpop.xlane.xlu0 %2225 }
0x103d   : > { %v2230_v13 = vmul.f32 0.03125, %v2226_v12 }
0x103f   : > { %v2232_v14 = vsub.f32 %v2220_v5, %v2230_v13 }
0x1040   : > { %v2229_v15 = vpop.xlane.xlu1 %2228 }
0x1041   : > { %v2231_v16 = vmul.f32 0.03125, %v2229_v15  ;;  %v2234_v31 = vmul.f32 %v2232_v14, %v2232_v14 }
0x1043   : > { %v2233_v17 = vsub.f32 %v2221_v10, %v2231_v16  ;;  %v2236_v61 = vsel %vm929_vm2, %v2234_v31, 0.0 }
0x1044   : > { %2237 = vadd.xlane.f32.xlu0 %v2236_v61 }
0x1045   : > { %v2235_v19 = vmul.f32 %v2233_v17, %v2233_v17 }
0x1047   : > { %v2239_v20 = vsel %vm929_vm2, %v2235_v19, 0.0 }
0x1048   : > { %2240 = vadd.xlane.f32.xlu1 %v2239_v20 }
0x10cd   : > { %v2238_v62 = vpop.xlane.xlu0 %2237 }
0x10ce   : > { %v2242_v23 = vmul.f32 0.03125, %v2238_v62 }
0x10d0   : > { %v2244_v24 = vadd.f32 1e-12, %v2242_v23 }
0x10d1   : > { %v2241_v25 = vpop.xlane.xlu1 %2240 }
0x10d2   : > { %3008 = vrsqrt.f32 %v2244_v24  ;;  %v2243_v30 = vmul.f32 0.03125, %v2241_v25 }
0x10d4   : > { %v2245_v26 = vadd.f32 1e-12, %v2243_v30 }
0x10d6   : > { %3010 = vrsqrt.f32 %v2245_v26 }
0x10df   : > { %v3009_v28 = vpop.eup %3008 }
0x10e0   : > { %v2248_v29 = vmul.f32 %v3009_v28, %v2232_v14 }
0x10e2   : > { %v2256_v35 = vmul.f32 %v2666_v27, %v2248_v29 }
0x10e3   : > { %v3011_v36 = vpop.eup %3010 }
0x10e4   : > { %v2264_v37 = vadd.f32 %v2667_v32, %v2256_v35  ;;  %v2249_v38 = vmul.f32 %v3011_v36, %v2233_v17 }
0x10e6   : > { %2266 = vst.msk [vmem:[#allocation2] sm:$0xff] %vm929_vm2, %v2264_v37  ;;  %v2257_v39 = vmul.f32 %v2666_v27, %v2249_v38  ;;  %2271 = sbr.rel (%p2668_p6) target bundleno = 4750 (0x128e), region = 108 }
0x10e8   : > { %v2265_v49 = vadd.f32 %v2667_v32, %v2257_v39 }
0x10ea   : > { %2267 = vst.msk [vmem:[#allocation2 + $0x8] sm:$0xff] %vm929_vm2, %v2265_v49 }
0x10eb   : > { %v3012_v41 = vld [vmem:[%s3647_s16 + $0x8] sm:$0xff]   ;;  %v2272_v53 = vpack.c.bf16 %v2264_v37, %v2264_v37  ;;  %v2273_v42 = vpack.c.bf16 %v2265_v49, %v2265_v49  ;;  %v3087_v43 = vmov 0.0   ;;  %v3013_v45 = vld [vmem:[%s3647_s16] sm:$0xff]   ;;  %vm3088_vm10 = vmmov 0  }
0x10ec   : > { %2869 = vmatprep.subr.bf16.mxu0 %v3087_v43  ;;  %2877 = vmatprep.subr.bf16.mxu1 %v3087_v43  ;;  %vm2290_vm11 = vcmask 1041409   ;;  %v3014_v40 = vld [vmem:[%s3648_s30 + $0x8] sm:$0xff]   ;;  %v3015_v18 = vld [vmem:[%s3648_s30] sm:$0xff]  }
0x10ed   : > { %2870 = vmatpush3.bf16.msra.mxu0 %v3012_v41  ;;  %2873 = vmatprep.mubr.msk.bf16.mxu0 %vm3088_vm10, %v3087_v43  ;;  %v2287_v33 = vunpack.c.l.b16 %v2272_v53  ;;  %v2288_v46 = vunpack.c.l.b16 %v2273_v42  ;;  %v2669_v21 = vld [vmem:[%s3649_s29] ss:$0 sm:$0xff] }
0x10ee   : > { %2871 = vmatprep.subr.bf16.mxu0 %v3087_v43  ;;  %2881 = vmatprep.mubr.msk.bf16.mxu1 %vm3088_vm10, %v3087_v43  ;;  %v2673_v57 = vld [vmem:[%s3650_s26] ss:$0 sm:$0xff] }
0x10ef   : > { %v2289_v47 = vrot.slane %v2288_v46, 7  ;;  %2878 = vmatpush3.bf16.msra.mxu1 %v3014_v40 }
0x10f0   : > { %2879 = vmatprep.subr.bf16.mxu1 %v3087_v43 }
0x10f1   : > { %2872 = vmatpush3.bf16.msra.mxu0 %v3013_v45  ;;  %v2291_v48 = vsel %vm2290_vm11, %v2289_v47, %v2287_v33 }
0x10f2   : > { %v2292_v34 = vpack.c.b16 %v2291_v48, %v2291_v48 }
0x10f3   : > { %2880 = vmatpush3.bf16.msra.mxu1 %v3015_v18 }
0x10f4   : > { %2874 = vmatmul.mubr.msk.bf16.vlgmr.msra.gmra.mxu0 %vm929_vm2, %v2292_v34 }
0x11b4   : > { %v2342_v22 = vpop.f32.mrf.mxu0 }
0x11b5   : > { %v2343_v50 = vadd.f32 %v2669_v21, %v2342_v22 }
0x11b6   : > { %v2875_v51 = vpop.f32.mrf.mxu0 }
0x11b7   : > { %3016 = vtanh.f32 %v2343_v50 }
0x11b8   : > { %v2345_v52 = vpop.f32.mrf.mxu0 }
0x11ba   : > { %v2876_v54 = vpop.f32.mrf.mxu0 }
0x11c4   : > { %v3017_v55 = vpop.eup %3016 }
0x11c5   : > { %v2349_v56 = vpack.c.bf16 %v3017_v55, %v3017_v55 }
0x11c7   : > { %2882 = vmatmul.mubr.msk.bf16.vlgmr.msra.gmra.mxu1 %vm929_vm2, %v2349_v56 }
0x1287   : > { %v2410_v58 = vpop.f32.mrf.mxu1 }
0x1288   : > { %v2411_v59 = vadd.f32 %v2673_v57, %v2410_v58 }
0x1289   : > { %v2883_v44 = vpop.f32.mrf.mxu1 }
0x128a   : > { %2416 = vst [vmem:[#allocation3] sm:$0x3] %v2411_v59 }
0x128b   : > { %v2413_v60 = vpop.f32.mrf.mxu1 }
0x128d   : > { %v2884_v63 = vpop.f32.mrf.mxu1 }
0x128e PF: > { %s3651_s0 = sld [smem:[#allocation7_spill]]  ;;  %s3089_s4 = smov [#allocation3]  }
0x128f   : > { %s2426_s21 = sshll.u32 %s3089_s4, 4  ;;  %s2427_s21 = int_to_ptr.vmem [resolvable:$true] %s2426_s21 }
0x1290   : > { %s3018_s18 = scalar_lea.vmem %s2427_s21, 32  ;;  %p3025_p11 = scmp.lt.s32.totalorder %s2427_s21, %s2427_s21 }
0x1291   : > { %p3019_p8 = scmp.ne.s32.totalorder %s2427_s21, %s3018_s18  ;;  %p3026_p12 = scmp.lt.s32.totalorder %s3018_s18, %s3018_s18 }
0x1293   : > { %p3027_p13 = por %p3026_p12, %p3025_p11 }
0x1294   : > { %s3652_s2 = sadd.s32 4294967295, %s3651_s0  }
0x1295   : > { %p3572_p7 = scmp.eq.s32.totalorder %s3652_s2, 1 }
0x1297   : > { %p3020_p9 = pnand %p3019_p8, %p3572_p7 }
0x1299   : > { %p3021_p10 = pneg %p3020_p9 }
0x129b   : > { %p3028_p0 = pnand %p3027_p13, %p3021_p10 }
0x129d   : > { %3031 = shalt.err (!%p3028_p0)
}
0x129e   : > { %s3654_s22 = sld [smem:[#allocation19_spill]] }
0x12a4   : > { %2886 = dma.vmem_to_hbm [thread:$0]  (%p3572_p7), %s2427_s21, 32, %s3654_s22, [#allocation4]  }
0x12a5   : > { %3055 = dma.done.wait (%p3572_p7), [#allocation4], 32  }
0x12a6   : > { %3057 = vsyncadd (%p3572_p7), [#allocation4], 4294967264 }
0x12a7 PF: > { %s3655_s28 = sld [smem:[#allocation7_spill]] }
0x12a8   : > { %s3656_s1 = sld [smem:[#allocation6_spill]] }
0x12a9   : > { %s3657_s22 = sld [smem:[#allocation8_spill]] }
0x12ad   : > { %s31_s23 = sadd.s32 1, %s3655_s28  }
0x12ae   : > { %p28_p1 = scmp.ge.s32.totalorder %s31_s23, 4  }
0x12b0   :  { %30 = sbr.rel (!%p28_p1) target bundleno = 14 (0xe), region = 175 }
0x12b5   :  { %2439 = vsyncpa [#allocation4], 1 }
0x12b6   :  { %2441 = vsyncpa [#allocation4 + $0x1], 1 }

</bundles_post_ra>
